<compile_context>
chip_gen: v7x
topology: tpu7x:2x2x1
jax: 0.10.0
libtpu: 0.0.40
codegen_flags: <defaults>
</compile_context>

<pallas_src>
import jax
import jax.numpy as jnp
from jax.experimental import pallas as pl
from jax.experimental.pallas import tpu as pltpu


def _round_up(v, m):
    return ((v + m - 1) // m) * m


def _make_gine_kernel(cache_msgs):
    def kernel(eps_ref, x_gat_ref, x_tile_ref, ea_ref, src_ref, dst_ref,
               w1_ref, b1_ref, w2_ref, b2_ref, out_ref, acc_ref, *cache):
        i = pl.program_id(0)                 # node-tile index
        e = pl.program_id(1)                 # edge-tile index (reduction axis, last)
        tn = out_ref.shape[0]                # node tile size
        te = src_ref.shape[0]                # edge tile size
        n_pad = x_gat_ref.shape[0]           # padded node count

        @pl.when(e == 0)
        def _():
            acc_ref[...] = jnp.zeros_like(acc_ref)

        def compute_msg():
            # Gather x[src] for this edge tile: 0/1 one-hot (bf16) @ x (bf16) on MXU.
            src_ids = src_ref[...]                                       # (te,1), -1 = pad
            oh_src = jnp.where(
                jax.lax.broadcasted_iota(jnp.int32, (te, n_pad), 1) == src_ids,
                1.0, 0.0).astype(jnp.bfloat16)                           # (te, n_pad)
            x_src = jnp.dot(oh_src, x_gat_ref[...],
                            preferred_element_type=jnp.float32)          # (te, Dp) f32
            return jnp.maximum(x_src + ea_ref[...], 0.0).astype(jnp.bfloat16)

        if cache_msgs:
            msg_cache_ref, = cache

            @pl.when(i == 0)                      # fill cache only on the first node tile
            def _():
                msg_cache_ref[e] = compute_msg()

            msg = msg_cache_ref[e]                # (te, Dp) bf16
        else:
            msg = compute_msg()

        # Scatter-add into this node tile: (tn, te) one-hot (bf16) @ msg (bf16), f32 acc.
        dst_ids = dst_ref[...]                                           # (1, te), -1 = pad
        node_ids = jax.lax.broadcasted_iota(jnp.int32, (tn, te), 0) + i * tn
        oh_dst = jnp.where(node_ids == dst_ids, 1.0, 0.0).astype(jnp.bfloat16)
        acc_ref[...] += jnp.dot(oh_dst, msg, preferred_element_type=jnp.float32)

        # Finalize on the last edge tile: residual + MLP + outer ReLU, lane-dense store.
        @pl.when(e == pl.num_programs(1) - 1)
        def _():
            eps = eps_ref[0]
            h = (1.0 + eps) * x_tile_ref[...] + acc_ref[...]             # (tn, Dp) f32
            h1 = jnp.maximum(
                jnp.dot(h.astype(jnp.bfloat16), w1_ref[...],
                        preferred_element_type=jnp.float32) + b1_ref[...], 0.0)
            out = jnp.maximum(
                jnp.dot(h1.astype(jnp.bfloat16), w2_ref[...],
                        preferred_element_type=jnp.float32) + b2_ref[...], 0.0)
            out_ref[...] = out.astype(out_ref.dtype)

    return kernel


def gnn_module_forward(x, edge_index, edge_attr, params, *,
                       tile_n=128, tile_e=256, cache_messages=None):
    """x: (N, D) f32, edge_index: (2, E) int32, edge_attr: (E, D) f32."""
    N, D = x.shape
    E = edge_index.shape[1]
    H = params["w1"].shape[1]
    O = params["w2"].shape[1]

    # Lane-dense padding of feature dims; node/edge counts padded to tile multiples.
    Dp = _round_up(D, 128)
    Hp = _round_up(H, 128)
    Op = _round_up(O, 128)
    Np = _round_up(N, tile_n)
    Ep = _round_up(E, tile_e)

    n_node_tiles = Np // tile_n
    n_edge_tiles = Ep // tile_e

    if cache_messages is None:
        cache_messages = (n_node_tiles > 1
                          and n_edge_tiles * tile_e * Dp * 2 <= 8 * 1024 * 1024)

    x_p = jnp.zeros((Np, Dp), jnp.float32).at[:N, :D].set(x)
    x_bf = x_p.astype(jnp.bfloat16)                       # gather source (halved DMA/VMEM)
    ea_p = jnp.zeros((Ep, Dp), jnp.float32).at[:E, :D].set(edge_attr)
    # Padded edges get index -1: their one-hot rows/cols are all-zero -> contribute nothing.
    src_p = jnp.full((Ep, 1), -1, jnp.int32).at[:E, 0].set(edge_index[0].astype(jnp.int32))
    dst_p = jnp.full((1, Ep), -1, jnp.int32).at[0, :E].set(edge_index[1].astype(jnp.int32))
    w1_p = jnp.zeros((Dp, Hp), jnp.float32).at[:D, :H].set(params["w1"]).astype(jnp.bfloat16)
    b1_p = jnp.zeros((1, Hp), jnp.float32).at[:, :H].set(params["b1"])
    w2_p = jnp.zeros((Hp, Op), jnp.float32).at[:H, :O].set(params["w2"]).astype(jnp.bfloat16)
    b2_p = jnp.zeros((1, Op), jnp.float32).at[:, :O].set(params["b2"])

    if cache_messages:
        # Edge-sized operands (edge_attr, src) are only consumed while filling the cache
        # (node tile 0); pin their block index to 0 afterwards so the pipeline stops
        # re-fetching them. dst is needed every step (scatter mask).
        edge_map = lambda i, e: (e * (1 - jnp.minimum(i, 1)), 0)
        # Cache is filled at i == 0 and reused by later node tiles -> keep sequential
        # single-core order on the node axis.
        dims = ("arbitrary", "arbitrary")
        extra_scratch = [pltpu.VMEM((n_edge_tiles, tile_e, Dp), jnp.bfloat16)]
    else:
        edge_map = lambda i, e: (e, 0)
        dims = ("parallel", "arbitrary")
        extra_scratch = []

    gather_passes = 1 if cache_messages else n_node_tiles
    cost = pl.CostEstimate(
        flops=2 * Ep * Np * Dp * gather_passes          # gather one-hot matmuls
              + 2 * Np * Ep * Dp                        # scatter one-hot matmuls
              + 2 * Np * (Dp * Hp + Hp * Op),           # MLP
        transcendentals=0,
        bytes_accessed=(2 * x_bf.size + 4 * x_p.size
                        + 4 * ea_p.size * gather_passes
                        + 4 * (src_p.size * gather_passes + dst_p.size * n_node_tiles)
                        + 2 * (w1_p.size + w2_p.size)
                        + 4 * (b1_p.size + b2_p.size)
                        + 4 * Np * Op),
    )

    grid_spec = pltpu.PrefetchScalarGridSpec(
        num_scalar_prefetch=0,
        grid=(n_node_tiles, n_edge_tiles),                # reduction (edge) axis last
        in_specs=[
            pl.BlockSpec(memory_space=pltpu.MemorySpace.SMEM),      # eps (scalar)
            pl.BlockSpec((Np, Dp), lambda i, e: (0, 0)),            # x bf16, full (gather src)
            pl.BlockSpec((tile_n, Dp), lambda i, e: (i, 0)),        # x f32 node tile (residual)
            pl.BlockSpec((tile_e, Dp), edge_map),                   # edge_attr tile
            pl.BlockSpec((tile_e, 1), edge_map),                    # src indices (column)
            pl.BlockSpec((1, tile_e), lambda i, e: (0, e)),         # dst indices (row)
            pl.BlockSpec((Dp, Hp), lambda i, e: (0, 0)),            # w1 (resident)
            pl.BlockSpec((1, Hp), lambda i, e: (0, 0)),             # b1
            pl.BlockSpec((Hp, Op), lambda i, e: (0, 0)),            # w2 (resident)
            pl.BlockSpec((1, Op), lambda i, e: (0, 0)),             # b2
        ],
        out_specs=pl.BlockSpec((tile_n, Op), lambda i, e: (i, 0)),
        scratch_shapes=[pltpu.VMEM((tile_n, Dp), jnp.float32)] + extra_scratch,
    )

    out_p = pl.pallas_call(
        _make_gine_kernel(cache_messages),
        out_shape=jax.ShapeDtypeStruct((Np, Op), jnp.float32),
        grid_spec=grid_spec,
        compiler_params=pltpu.CompilerParams(dimension_semantics=dims),
        cost_estimate=cost,
    )(params["eps"], x_bf, x_p, ea_p, src_p, dst_p, w1_p, b1_p, w2_p, b2_p)

    return out_p[:N, :O]


def init_params(key, input_dim):
    hidden_dim = input_dim // 2
    output_dim = 2 * input_dim
    k1, k2, k3, k4 = jax.random.split(key, 4)
    # PyTorch Linear weights are (out, in); stored pre-transposed as (in, out).
    w1 = jax.random.normal(k1, (input_dim, hidden_dim), jnp.float32) * 0.1
    b1 = jax.random.normal(k2, (1, hidden_dim), jnp.float32) * 0.1
    w2 = jax.random.normal(k3, (hidden_dim, output_dim), jnp.float32) * 0.1
    b2 = jax.random.normal(k4, (1, output_dim), jnp.float32) * 0.1
    eps = jnp.zeros((1,), jnp.float32)   # train_eps=True -> learnable, init 0
    return {"w1": w1, "b1": b1, "w2": w2, "b2": b2, "eps": eps}


if __name__ == "__main__":
    key = jax.random.PRNGKey(0)
    k_x, k_e, k_s, k_d, k_p = jax.random.split(key, 5)

    N = 256          # nodes   -> 2 node tiles of 128
    E = 512          # edges   -> 2 edge tiles of 256
    D = 32           # input_dim (module default)

    x = jax.random.normal(k_x, (N, D), jnp.float32)
    edge_attr = jax.random.normal(k_e, (E, D), jnp.float32)
    src = jax.random.randint(k_s, (E,), 0, N, jnp.int32)
    dst = jax.random.randint(k_d, (E,), 0, N, jnp.int32)
    edge_index = jnp.stack([src, dst], axis=0)          # (2, E)

    params = init_params(k_p, D)

    out_cached = jax.block_until_ready(
        gnn_module_forward(x, edge_index, edge_attr, params))                      # cached path
    out_stream = jax.block_until_ready(
        gnn_module_forward(x, edge_index, edge_attr, params, cache_messages=False))  # recompute path

    # Plain-JAX reference mirroring the kernel's bf16-operand / f32-accumulate matmuls.
    bf = jnp.bfloat16
    x_src = x.astype(bf).astype(jnp.float32)[src]
    msg = jnp.maximum(x_src + edge_attr, 0.0).astype(bf).astype(jnp.float32)
    aggr = jnp.zeros_like(x).at[dst].add(msg)
    h = (1.0 + params["eps"][0]) * x + aggr
    h1 = jnp.maximum(
        jnp.dot(h.astype(bf), params["w1"].astype(bf),
                preferred_element_type=jnp.float32) + params["b1"], 0.0)
    ref = jnp.maximum(
        jnp.dot(h1.astype(bf), params["w2"].astype(bf),
                preferred_element_type=jnp.float32) + params["b2"], 0.0)

    for out in (out_cached, out_stream):
        assert out.shape == (N, 2 * D), out.shape
        max_err = float(jnp.max(jnp.abs(out - ref)))
        assert jnp.allclose(out, ref, atol=1e-2, rtol=1e-2), f"max abs err {max_err}"

    print("KERNEL_OK")
</pallas_src>

<mosaic_0001>
module attributes {stable_mosaic.version = 11 : i64} {
  func.func @kernel(%arg0: i32, %arg1: i32, %arg2: memref<1xf32, #tpu.memory_space<smem>>, %arg3: memref<256x128xbf16, #tpu.memory_space<vmem>>, %arg4: memref<128x128xf32, #tpu.memory_space<vmem>>, %arg5: memref<256x128xf32, #tpu.memory_space<vmem>>, %arg6: memref<256x1xi32, #tpu.memory_space<vmem>>, %arg7: memref<1x256xi32, #tpu.memory_space<vmem>>, %arg8: memref<128x128xbf16, #tpu.memory_space<vmem>>, %arg9: memref<1x128xf32, #tpu.memory_space<vmem>>, %arg10: memref<128x128xbf16, #tpu.memory_space<vmem>>, %arg11: memref<1x128xf32, #tpu.memory_space<vmem>>, %arg12: memref<128x128xf32, #tpu.memory_space<vmem>>, %arg13: memref<128x128xf32, #tpu.memory_space<vmem>>, %arg14: memref<2x256x128xbf16, #tpu.memory_space<vmem>>) attributes {dimension_semantics = [#tpu.dimension_semantics<arbitrary>, #tpu.dimension_semantics<arbitrary>], iteration_bounds = array<i64: 2, 2>, scalar_prefetch = 0 : i64, scratch_operands = 2 : i64, tpu.core_type = #tpu.core_type<tc>, window_params = [{transform_indices = @transform_0, window_bounds = array<i64: 1>}, {pipeline_mode = #tpu.pipeline_mode<synchronous>, transform_indices = @transform_1, window_bounds = array<i64: 256, 128>}, {transform_indices = @transform_2, window_bounds = array<i64: 128, 128>}, {transform_indices = @transform_3, window_bounds = array<i64: 256, 128>}, {transform_indices = @transform_4, window_bounds = array<i64: 256, 1>}, {transform_indices = @transform_5, window_bounds = array<i64: 1, 256>}, {pipeline_mode = #tpu.pipeline_mode<synchronous>, transform_indices = @transform_6, window_bounds = array<i64: 128, 128>}, {pipeline_mode = #tpu.pipeline_mode<synchronous>, transform_indices = @transform_7, window_bounds = array<i64: 1, 128>}, {pipeline_mode = #tpu.pipeline_mode<synchronous>, transform_indices = @transform_8, window_bounds = array<i64: 128, 128>}, {pipeline_mode = #tpu.pipeline_mode<synchronous>, transform_indices = @transform_9, window_bounds = array<i64: 1, 128>}, {transform_indices = @transform_10, window_bounds = array<i64: 128, 128>}]} {
    %c0_i32 = arith.constant 0 : i32
    %0 = arith.cmpi eq, %arg1, %c0_i32 : i32
    %1 = arith.extui %0 : i1 to i32
    %c0_i32_0 = arith.constant 0 : i32
    %2 = arith.cmpi ne, %1, %c0_i32_0 : i32
    scf.if %2 {
      %cst_13 = arith.constant 0.000000e+00 : f32
      %27 = vector.broadcast %cst_13 : f32 to vector<128x128xf32>
      %c0_14 = arith.constant 0 : index
      %c0_15 = arith.constant 0 : index
      %28 = vector.load %arg13[%c0_14, %c0_15] : memref<128x128xf32, #tpu.memory_space<vmem>>, vector<128x128xf32>
      tpu.vector_store %arg13[%c0_14, %c0_15], %27 {strides = array<i32>} : memref<128x128xf32, #tpu.memory_space<vmem>>, vector<128x128xf32>,
    } else {
    }
    %c0_i32_1 = arith.constant 0 : i32
    %3 = arith.cmpi eq, %arg0, %c0_i32_1 : i32
    %4 = arith.extui %3 : i1 to i32
    %c0_i32_2 = arith.constant 0 : i32
    %5 = arith.cmpi ne, %4, %c0_i32_2 : i32
    scf.if %5 {
      %c0_13 = arith.constant 0 : index
      %c0_14 = arith.constant 0 : index
      %27 = vector.load %arg6[%c0_13, %c0_14] : memref<256x1xi32, #tpu.memory_space<vmem>>, vector<256x1xi32>
      %28 = tpu.iota {dimensions = array<i32: 1>} : vector<256x256xi32>
      %29 = vector.broadcast %27 : vector<256x1xi32> to vector<256x256xi32>
      %30 = arith.cmpi eq, %28, %29 : vector<256x256xi32>
      %cst_15 = arith.constant 1.000000e+00 : f32
      %cst_16 = arith.constant 0.000000e+00 : f32
      %31 = vector.broadcast %cst_15 : f32 to vector<256x256xf32>
      %32 = vector.broadcast %cst_16 : f32 to vector<256x256xf32>
      %33 = arith.select %30, %31, %32 : vector<256x256xi1>, vector<256x256xf32>
      %34 = arith.truncf %33 : vector<256x256xf32> to vector<256x256xbf16>
      %c0_17 = arith.constant 0 : index
      %c0_18 = arith.constant 0 : index
      %35 = vector.load %arg3[%c0_17, %c0_18] : memref<256x128xbf16, #tpu.memory_space<vmem>>, vector<256x128xbf16>
      %cst_19 = arith.constant dense<0.000000e+00> : vector<256x128xf32>
      %36 = tpu.matmul %34, %35, %cst_19 {dimension_numbers = #tpu.dot_dimension_numbers<[1], [0], [0], [1], [0, 0, 1, 1], [], []>} : vector<256x256xbf16>, vector<256x128xbf16>, vector<256x128xf32> -> vector<256x128xf32>
      %c0_20 = arith.constant 0 : index
      %c0_21 = arith.constant 0 : index
      %37 = vector.load %arg5[%c0_20, %c0_21] : memref<256x128xf32, #tpu.memory_space<vmem>>, vector<256x128xf32>
      %38 = arith.addf %36, %37 : vector<256x128xf32>
      %cst_22 = arith.constant 0.000000e+00 : f32
      %39 = vector.broadcast %cst_22 : f32 to vector<256x128xf32>
      %40 = arith.maximumf %38, %39 : vector<256x128xf32>
      %41 = arith.truncf %40 : vector<256x128xf32> to vector<256x128xbf16>
      %42 = arith.index_cast %arg1 : i32 to index
      %c0_23 = arith.constant 0 : index
      %c0_24 = arith.constant 0 : index
      %43 = vector.load %arg14[%42, %c0_23, %c0_24] : memref<2x256x128xbf16, #tpu.memory_space<vmem>>, vector<1x256x128xbf16>
      %44 = vector.shape_cast %43 : vector<1x256x128xbf16> to vector<256x128xbf16>
      %45 = vector.shape_cast %41 : vector<256x128xbf16> to vector<1x256x128xbf16>
      tpu.vector_store %arg14[%42, %c0_23, %c0_24], %45 {strides = array<i32>} : memref<2x256x128xbf16, #tpu.memory_space<vmem>>, vector<1x256x128xbf16>,
    } else {
    }
    %6 = arith.index_cast %arg1 : i32 to index
    %c0 = arith.constant 0 : index
    %c0_3 = arith.constant 0 : index
    %7 = vector.load %arg14[%6, %c0, %c0_3] : memref<2x256x128xbf16, #tpu.memory_space<vmem>>, vector<1x256x128xbf16>
    %8 = vector.shape_cast %7 : vector<1x256x128xbf16> to vector<256x128xbf16>
    %c0_4 = arith.constant 0 : index
    %c0_5 = arith.constant 0 : index
    %9 = vector.load %arg7[%c0_4, %c0_5] : memref<1x256xi32, #tpu.memory_space<vmem>>, vector<1x256xi32>
    %10 = tpu.iota {dimensions = array<i32: 0>} : vector<128x256xi32>
    %c128_i32 = arith.constant 128 : i32
    %11 = arith.muli %arg0, %c128_i32 : i32
    %12 = vector.broadcast %11 : i32 to vector<128x256xi32>
    %13 = arith.addi %10, %12 : vector<128x256xi32>
    %14 = vector.broadcast %9 : vector<1x256xi32> to vector<128x256xi32>
    %15 = arith.cmpi eq, %13, %14 : vector<128x256xi32>
    %cst = arith.constant 1.000000e+00 : f32
    %cst_6 = arith.constant 0.000000e+00 : f32
    %16 = vector.broadcast %cst : f32 to vector<128x256xf32>
    %17 = vector.broadcast %cst_6 : f32 to vector<128x256xf32>
    %18 = arith.select %15, %16, %17 : vector<128x256xi1>, vector<128x256xf32>
    %19 = arith.truncf %18 : vector<128x256xf32> to vector<128x256xbf16>
    %c0_7 = arith.constant 0 : index
    %c0_8 = arith.constant 0 : index
    %20 = vector.load %arg13[%c0_7, %c0_8] : memref<128x128xf32, #tpu.memory_space<vmem>>, vector<128x128xf32>
    %cst_9 = arith.constant dense<0.000000e+00> : vector<128x128xf32>
    %21 = tpu.matmul %19, %8, %cst_9 {dimension_numbers = #tpu.dot_dimension_numbers<[1], [0], [0], [1], [0, 0, 1, 1], [], []>} : vector<128x256xbf16>, vector<256x128xbf16>, vector<128x128xf32> -> vector<128x128xf32>
    %22 = arith.addf %20, %21 : vector<128x128xf32>
    %c0_10 = arith.constant 0 : index
    %c0_11 = arith.constant 0 : index
    %23 = vector.load %arg13[%c0_10, %c0_11] : memref<128x128xf32, #tpu.memory_space<vmem>>, vector<128x128xf32>
    tpu.vector_store %arg13[%c0_10, %c0_11], %22 {strides = array<i32>} : memref<128x128xf32, #tpu.memory_space<vmem>>, vector<128x128xf32>,
    %c1_i32 = arith.constant 1 : i32
    %24 = arith.cmpi eq, %arg1, %c1_i32 : i32
    %25 = arith.extui %24 : i1 to i32
    %c0_i32_12 = arith.constant 0 : i32
    %26 = arith.cmpi ne, %25, %c0_i32_12 : i32
    scf.if %26 {
      %c0_13 = arith.constant 0 : index
      %27 = memref.load %arg2[%c0_13] : memref<1xf32, #tpu.memory_space<smem>>
      %cst_14 = arith.constant 1.000000e+00 : f32
      %28 = arith.addf %cst_14, %27 : f32
      %c0_15 = arith.constant 0 : index
      %c0_16 = arith.constant 0 : index
      %29 = vector.load %arg4[%c0_15, %c0_16] : memref<128x128xf32, #tpu.memory_space<vmem>>, vector<128x128xf32>
      %30 = vector.broadcast %28 : f32 to vector<128x128xf32>
      %31 = arith.mulf %30, %29 : vector<128x128xf32>
      %c0_17 = arith.constant 0 : index
      %c0_18 = arith.constant 0 : index
      %32 = vector.load %arg13[%c0_17, %c0_18] : memref<128x128xf32, #tpu.memory_space<vmem>>, vector<128x128xf32>
      %33 = arith.addf %31, %32 : vector<128x128xf32>
      %34 = arith.truncf %33 : vector<128x128xf32> to vector<128x128xbf16>
      %c0_19 = arith.constant 0 : index
      %c0_20 = arith.constant 0 : index
      %35 = vector.load %arg8[%c0_19, %c0_20] : memref<128x128xbf16, #tpu.memory_space<vmem>>, vector<128x128xbf16>
      %cst_21 = arith.constant dense<0.000000e+00> : vector<128x128xf32>
      %36 = tpu.matmul %34, %35, %cst_21 {dimension_numbers = #tpu.dot_dimension_numbers<[1], [0], [0], [1], [0, 0, 1, 1], [], []>} : vector<128x128xbf16>, vector<128x128xbf16>, vector<128x128xf32> -> vector<128x128xf32>
      %c0_22 = arith.constant 0 : index
      %c0_23 = arith.constant 0 : index
      %37 = vector.load %arg9[%c0_22, %c0_23] : memref<1x128xf32, #tpu.memory_space<vmem>>, vector<1x128xf32>
      %38 = vector.broadcast %37 : vector<1x128xf32> to vector<128x128xf32>
      %39 = arith.addf %36, %38 : vector<128x128xf32>
      %cst_24 = arith.constant 0.000000e+00 : f32
      %40 = vector.broadcast %cst_24 : f32 to vector<128x128xf32>
      %41 = arith.maximumf %39, %40 : vector<128x128xf32>
      %42 = arith.truncf %41 : vector<128x128xf32> to vector<128x128xbf16>
      %c0_25 = arith.constant 0 : index
      %c0_26 = arith.constant 0 : index
      %43 = vector.load %arg10[%c0_25, %c0_26] : memref<128x128xbf16, #tpu.memory_space<vmem>>, vector<128x128xbf16>
      %cst_27 = arith.constant dense<0.000000e+00> : vector<128x128xf32>
      %44 = tpu.matmul %42, %43, %cst_27 {dimension_numbers = #tpu.dot_dimension_numbers<[1], [0], [0], [1], [0, 0, 1, 1], [], []>} : vector<128x128xbf16>, vector<128x128xbf16>, vector<128x128xf32> -> vector<128x128xf32>
      %c0_28 = arith.constant 0 : index
      %c0_29 = arith.constant 0 : index
      %45 = vector.load %arg11[%c0_28, %c0_29] : memref<1x128xf32, #tpu.memory_space<vmem>>, vector<1x128xf32>
      %46 = vector.broadcast %45 : vector<1x128xf32> to vector<128x128xf32>
      %47 = arith.addf %44, %46 : vector<128x128xf32>
      %cst_30 = arith.constant 0.000000e+00 : f32
      %48 = vector.broadcast %cst_30 : f32 to vector<128x128xf32>
      %49 = arith.maximumf %47, %48 : vector<128x128xf32>
      %c0_31 = arith.constant 0 : index
      %c0_32 = arith.constant 0 : index
      %50 = vector.load %arg12[%c0_31, %c0_32] : memref<128x128xf32, #tpu.memory_space<vmem>>, vector<128x128xf32>
      tpu.vector_store %arg12[%c0_31, %c0_32], %49 {strides = array<i32>} : memref<128x128xf32, #tpu.memory_space<vmem>>, vector<128x128xf32>,
    } else {
    }
    return
  }
  func.func @transform_0(%arg0: i32, %arg1: i32) -> i32 {
    %c0_i32 = arith.constant 0 : i32
    %c0_i32_0 = arith.constant 0 : i32
    return %c0_i32 : i32
  }
  func.func @transform_1(%arg0: i32, %arg1: i32) -> (i32, i32) {
    %c0_i32 = arith.constant 0 : i32
    %c0_i32_0 = arith.constant 0 : i32
    %c0_i32_1 = arith.constant 0 : i32
    return %c0_i32, %c0_i32_0 : i32, i32
  }
  func.func @transform_2(%arg0: i32, %arg1: i32) -> (i32, i32) {
    %c0_i32 = arith.constant 0 : i32
    %c0_i32_0 = arith.constant 0 : i32
    return %arg0, %c0_i32 : i32, i32
  }
  func.func @transform_3(%arg0: i32, %arg1: i32) -> (i32, i32) {
    %c1_i32 = arith.constant 1 : i32
    %0 = arith.minsi %arg0, %c1_i32 : i32
    %c1_i32_0 = arith.constant 1 : i32
    %1 = arith.subi %c1_i32_0, %0 : i32
    %2 = arith.muli %arg1, %1 : i32
    %c0_i32 = arith.constant 0 : i32
    %c0_i32_1 = arith.constant 0 : i32
    return %2, %c0_i32 : i32, i32
  }
  func.func @transform_4(%arg0: i32, %arg1: i32) -> (i32, i32) {
    %c1_i32 = arith.constant 1 : i32
    %0 = arith.minsi %arg0, %c1_i32 : i32
    %c1_i32_0 = arith.constant 1 : i32
    %1 = arith.subi %c1_i32_0, %0 : i32
    %2 = arith.muli %arg1, %1 : i32
    %c0_i32 = arith.constant 0 : i32
    %c0_i32_1 = arith.constant 0 : i32
    return %2, %c0_i32 : i32, i32
  }
  func.func @transform_5(%arg0: i32, %arg1: i32) -> (i32, i32) {
    %c0_i32 = arith.constant 0 : i32
    %c0_i32_0 = arith.constant 0 : i32
    return %c0_i32, %arg1 : i32, i32
  }
  func.func @transform_6(%arg0: i32, %arg1: i32) -> (i32, i32) {
    %c0_i32 = arith.constant 0 : i32
    %c0_i32_0 = arith.constant 0 : i32
    %c0_i32_1 = arith.constant 0 : i32
    return %c0_i32, %c0_i32_0 : i32, i32
  }
  func.func @transform_7(%arg0: i32, %arg1: i32) -> (i32, i32) {
    %c0_i32 = arith.constant 0 : i32
    %c0_i32_0 = arith.constant 0 : i32
    %c0_i32_1 = arith.constant 0 : i32
    return %c0_i32, %c0_i32_0 : i32, i32
  }
  func.func @transform_8(%arg0: i32, %arg1: i32) -> (i32, i32) {
    %c0_i32 = arith.constant 0 : i32
    %c0_i32_0 = arith.constant 0 : i32
    %c0_i32_1 = arith.constant 0 : i32
    return %c0_i32, %c0_i32_0 : i32, i32
  }
  func.func @transform_9(%arg0: i32, %arg1: i32) -> (i32, i32) {
    %c0_i32 = arith.constant 0 : i32
    %c0_i32_0 = arith.constant 0 : i32
    %c0_i32_1 = arith.constant 0 : i32
    return %c0_i32, %c0_i32_0 : i32, i32
  }
  func.func @transform_10(%arg0: i32, %arg1: i32) -> (i32, i32) {
    %c0_i32 = arith.constant 0 : i32
    %c0_i32_0 = arith.constant 0 : i32
    return %arg0, %c0_i32 : i32, i32
  }
}

</mosaic_0001>

<bundles_post_ra>
// kernel: tpu_custom_call.1
= control target key start
LH: loop header
LB: loop body
LE: loop exit
PB: predicated region body
PF: predicated region fallthrough
CT: control target
= control target key end

     0   :  { %s3816_s0 = inlined_call_operand.<no memory space> [shape: f32[1], index: 0, kind: input, shape index: {}]   ;;  %s3817_s1 = inlined_call_operand.hbm [shape: bf16[256,128], index: 1, kind: input, shape index: {}]   ;;  %s3818_s2 = inlined_call_operand.hbm [shape: f32[256,128], index: 2, kind: input, shape index: {}]   ;;  %s3819_s3 = inlined_call_operand.vmem [shape: f32[512,128], index: 3, kind: input, shape index: {}]   ;;  %s3820_s4 = inlined_call_operand.vmem [shape: s32[512,1], index: 4, kind: input, shape index: {}]   ;;  %s3821_s5 = inlined_call_operand.vmem [shape: s32[1,512], index: 5, kind: input, shape index: {}]   ;;  %s3822_s6 = inlined_call_operand.hbm [shape: bf16[128,128], index: 6, kind: input, shape index: {}]   ;;  %s3823_s7 = inlined_call_operand.vmem [shape: f32[1,128], index: 7, kind: input, shape index: {}]   ;;  %s3824_s8 = inlined_call_operand.hbm [shape: bf16[128,128], index: 8, kind: input, shape index: {}]   ;;  %s3825_s9 = inlined_call_operand.vmem [shape: f32[1,128], index: 9, kind: input, shape index: {}]   ;;  %s3826_s10 = inlined_call_operand.hbm [shape: f32[256,128], index: 10, kind: output, shape index: {}]  }
   0x1   :  { %3841 = sst [smem:[#allocation24_spill]] %s3817_s1 }
   0x2   :  { %3842 = sst [smem:[#allocation25_spill]] %s3819_s3 }
   0x3   :  { %3843 = sst [smem:[#allocation26_spill]] %s3820_s4 }
   0x4   :  { %3844 = sst [smem:[#allocation27_spill]] %s3821_s5 }
   0x5   :  { %3845 = sst [smem:[#allocation28_spill]] %s3823_s7 }
   0x6   :  { %3846 = sst [smem:[#allocation29_spill]] %s3825_s9 }
   0x7   :  { %3847 = sst [smem:[#allocation30_spill]] %s3826_s10 }
   0x8   :  { %15 = sst [smem:[#allocation4]] %s3816_s0 }
   0x9   :  { %16 = vsyncpa [#allocation6], 0 }
   0xa   :  { %17 = vsyncpa [#allocation9], 0 }
   0xb   :  { %19 = vsyncpa [#allocation9 + $0x1], 0 }
   0xc   :  { %20 = vsyncpa [#allocation12], 0 }
   0xd   :  { %21 = vsyncpa [#allocation7], 0 }
   0xe   :  { %23 = vsyncpa [#allocation7 + $0x1], 0  ;;  %s3109_s15 = smov 0   ;;  %s3111_s16 = smov 0  }
   0xf   :  { %s3113_s17 = smov 0   ;;  %s3115_s18 = smov 0  }
  0x10   :  { %s3117_s19 = smov 0   ;;  %s3119_s20 = smov 0  }
  0x11   :  { %s3121_s21 = smov 0   ;;  %s3123_s0 = smov 0  }
  0x12 LB: > { %3848 = sst [smem:[#allocation19_spill]] %s3006_s15  ;;  %s3150_s22 = sadd.s32 4294967295, %s3034_s0   ;;  %s3034_s0 = sphi %s3123_s0, %s29_s0   ;;  %s3030_s21 = sphi %s3121_s21, %s3902_s21   ;;  %s3026_s20 = sphi %s3119_s20, %s3901_s20   ;;  %s3022_s19 = sphi %s3117_s19, %s3900_s19   ;;  %s3018_s18 = sphi %s3115_s18, %s3899_s18   ;;  %s3014_s17 = sphi %s3113_s17, %s3898_s17   ;;  %s3010_s16 = sphi %s3111_s16, %s3897_s16   ;;  %s3006_s15 = sphi %s3109_s15, %s3896_s15  }
  0x13   : > { %3849 = sst [smem:[#allocation20_spill]] %s3018_s18  ;;  %s2186_s23 = sadd.s32 4294967294, %s3034_s0  }
  0x14   : > { %3850 = sst [smem:[#allocation21_spill]] %s3022_s19  ;;  %p97_p0 = scmp.ne.s32.totalorder %s3014_s17, %s3010_s16 }
  0x15   : > { %p98_p1 = scmp.eq.s32.totalorder %s3034_s0, 0  ;;  %p103_p2 = scmp.ne.s32.totalorder %s3010_s16, %s3006_s15 }
  0x16   : > { %p3830_p3 = scmp.eq.s32.totalorder %s3150_s22, 0  ;;  %p305_p4 = scmp.eq.s32.totalorder %s3150_s22, 3 }
  0x17   : > { %p3161_p5 = por %p98_p1, %p97_p0  ;;  %p311_p6 = scmp.eq.s32.totalorder %s2186_s23, 3 }
  0x18   : > { %p3167_p7 = por %p3830_p3, %p103_p2  ;;  %p3171_p8 = por %p305_p4, %p97_p0 }
  0x19   : > { %p3175_p9 = por %p311_p6, %p103_p2  ;;  %p2187_p10 = scmp.ge.s32.totalorder %s3034_s0, 1 }
  0x1a   : > { %s3852_s26 = scalar_select %p3167_p7, 1, 0 }
  0x1b   : > { %s3853_s27 = scalar_select %p3171_p8, 1, 0 }
  0x1c   : > { %s3855_s28 = scalar_select %p3175_p9, 1, 0 }
  0x1d   : > { %3854 = sst [smem:[#allocation22_spill]] %s3853_s27  ;;  %p318_p11 = scmp.lt.s32.totalorder %s3034_s0, 5 }
  0x1e   : > { %3856 = sst [smem:[#allocation23_spill]] %s3855_s28  ;;  %s3036_s30 = smov [#allocation10]  }
  0x1f   : > { %p3181_p12 = pnand %p2187_p10, %p318_p11  ;;  %s346_s11 = sshll.u32 %s3036_s30, 4  ;;  %s347_s11 = int_to_ptr.vmem [resolvable:$true] %s346_s11 }
  0x20   : > { %p2694_p0 = scmp.lt.s32.totalorder %s3034_s0, 4  ;;  %s2810_s24 = scalar_lea.hbm %s3822_s6, 1024 }
  0x21   : > { %s3857_s29 = scalar_select %p3181_p12, 1, 0 }
  0x22   : > { %p2673_p13 = pneg %p3181_p12  ;;  %p3196_p2 = pnand %p2694_p0, %p3161_p5 }
  0x23   : > { %p2811_p4 = scmp.ne.s32.totalorder %s3822_s6, %s2810_s24  ;;  %p2817_p11 = scmp.lt.u32.totalorder %s2810_s24, %s3822_s6 }
  0x24   : > { %p3190_p1 = pnand %p2673_p13, %p3830_p3 }
  0x25   : > { %s3859_s13 = scalar_select %p3196_p2, 1, 0 }
  0x26   : > { %p3208_p6 = pneg %p3190_p1 }
  0x28   : > { %p2813_p10 = pnand %p3208_p6, %p2811_p4 }
  0x2a   : > { %p2814_p5 = pneg %p2813_p10 }
  0x2c   : > { %p2819_p13 = pnand %p2817_p11, %p2814_p5 }
  0x2e   : > { %2822 = shalt.err (!%p2819_p13)
}
  0x2f   : > { %s2823_s14 = scalar_lea.vmem %s347_s11, 1024  ;;  %p2831_p8 = scmp.lt.s32.totalorder %s347_s11, %s347_s11 }
  0x30   : > { %p2824_p0 = scmp.ne.s32.totalorder %s347_s11, %s2823_s14  ;;  %p2832_p7 = scmp.lt.s32.totalorder %s2823_s14, %s2823_s14 }
  0x32   : > { %p2826_p3 = pnand %p2824_p0, %p3208_p6  ;;  %p2833_p12 = por %p2832_p7, %p2831_p8 }
  0x34   : > { %p2827_p9 = pneg %p2826_p3 }
  0x36   : > { %p2834_p2 = pnand %p2833_p12, %p2827_p9 }
  0x38   : > { %2837 = shalt.err (!%p2834_p2)
}
  0x39   : > { %s3037_s28 = smov 64   ;;  %s3038_s23 = smov 4  }
  0x3a   : > { %2679 = dma.hbm_to_vmem [thread:$0]  (!%p3190_p1), %s3822_s6, 1024, %s347_s11, [#allocation9], %s3037_s28, %s3037_s28, %s3038_s23  }
  0x3b   : > { %s3039_s30 = smov [#allocation5]   ;;  %s3040_s27 = smov [#allocation11]  }
  0x3c   : > { %s333_s25 = sshll.u32 %s3039_s30, 4  ;;  %s362_s14 = sshll.u32 %s3040_s27, 4  ;;  %s334_s25 = int_to_ptr.vmem [resolvable:$true] %s333_s25  ;;  %s363_s14 = int_to_ptr.vmem [resolvable:$true] %s362_s14 }
  0x3d   : > { %s3861_s1 = sld [smem:[#allocation24_spill]] }
  0x43   : > { %s2838_s4 = scalar_lea.hbm %s3861_s1, 2048 }
  0x44   : > { %p2839_p3 = scmp.ne.s32.totalorder %s3861_s1, %s2838_s4  ;;  %p2845_p9 = scmp.lt.u32.totalorder %s2838_s4, %s3861_s1 }
  0x46   : > { %p2841_p7 = pnand %p2839_p3, %p3208_p6 }
  0x48   : > { %p2842_p8 = pneg %p2841_p7 }
  0x4a   : > { %p2847_p12 = pnand %p2845_p9, %p2842_p8 }
  0x4c   : > { %2850 = shalt.err (!%p2847_p12)
}
  0x4d   : > { %s2851_s11 = scalar_lea.vmem %s334_s25, 2048  ;;  %p2859_p5 = scmp.lt.s32.totalorder %s334_s25, %s334_s25 }
  0x4e   : > { %p2852_p2 = scmp.ne.s32.totalorder %s334_s25, %s2851_s11  ;;  %p2860_p11 = scmp.lt.s32.totalorder %s2851_s11, %s2851_s11 }
  0x50   : > { %p2854_p4 = pnand %p2852_p2, %p3208_p6  ;;  %p2861_p13 = por %p2860_p11, %p2859_p5 }
  0x52   : > { %p2855_p10 = pneg %p2854_p4 }
  0x54   : > { %p2862_p0 = pnand %p2861_p13, %p2855_p10 }
  0x56   : > { %2865 = shalt.err (!%p2862_p0)
}
  0x57   : > { %2676 = dma.hbm_to_vmem [thread:$0]  (!%p3190_p1), %s3861_s1, 2048, %s334_s25, [#allocation6], %s3037_s28, %s3037_s28, %s3038_s23  }
  0x58   : > { %s2866_s9 = scalar_lea.hbm %s3824_s8, 1024 }
  0x59   : > { %p2867_p3 = scmp.ne.s32.totalorder %s3824_s8, %s2866_s9  ;;  %p2873_p9 = scmp.lt.u32.totalorder %s2866_s9, %s3824_s8 }
  0x5b   : > { %p2869_p7 = pnand %p2867_p3, %p3208_p6 }
  0x5d   : > { %p2870_p8 = pneg %p2869_p7 }
  0x5f   : > { %p2875_p12 = pnand %p2873_p9, %p2870_p8 }
  0x61   : > { %2878 = shalt.err (!%p2875_p12)
}
  0x62   : > { %s2879_s24 = scalar_lea.vmem %s363_s14, 1024  ;;  %p2887_p5 = scmp.lt.s32.totalorder %s363_s14, %s363_s14 }
  0x63   : > { %p2880_p2 = scmp.ne.s32.totalorder %s363_s14, %s2879_s24  ;;  %p2888_p11 = scmp.lt.s32.totalorder %s2879_s24, %s2879_s24 }
  0x65   : > { %p2882_p4 = pnand %p2880_p2, %p3208_p6  ;;  %p2889_p13 = por %p2888_p11, %p2887_p5 }
  0x67   : > { %p2883_p10 = pneg %p2882_p4 }
  0x69   : > { %p2890_p0 = pnand %p2889_p13, %p2883_p10 }
  0x6b   : > { %2893 = shalt.err (!%p2890_p0)
}
  0x6c   : > { %2682 = dma.hbm_to_vmem [thread:$0]  (!%p3190_p1), %s3824_s8, 1024, %s363_s14, [#allocation12], %s3037_s28, %s3037_s28, %s3038_s23  }
  0x6d   : > { %s38_s15 = sadd.s32 1, %s3026_s20  ;;  %s41_s11 = sadd.s32 1, %s3030_s21 }
  0x6e   : > { %p39_p6 = scmp.ge.s32.totalorder %s38_s15, 2  ;;  %s379_s3 = sand.u32 1, %s3034_s0  }
  0x6f   : > { %s381_s4 = sand.u32 1, %s3014_s17   ;;  %s2349_s5 = sshll.u32 %s3030_s21, 11 }
  0x70   : > { %s3904_s15 = smov (%p39_p6, %s38_s15), 0  ;;  %s3906_s11 = smov (!%p39_p6, %s41_s11), %s3030_s21 }
  0x71   : > { %s2192_s12 = sshll.u32 %s381_s4, 7  ;;  %p43_p3 = scmp.ge.s32.totalorder %s3906_s11, 2 }
  0x72   : > { %s383_s7 = scalar_lea.vmem [#allocation8], %s2192_s12  ;;  %s3282_s23 = scalar_lea.hbm %s3818_s2, %s2349_s5 }
  0x73   : > { %s390_s9 = sshll.u32 %s383_s7, 4  ;;  %s3908_s11 = smov (%p43_p3, %s3906_s11), 0  ;;  %s3284_s9 = int_to_ptr.vmem [resolvable:$true] %s390_s9 }
  0x74   : > { %s87_s14 = ssub.s32 %s3030_s21, %s3908_s11  ;;  %s3292_s27 = scalar_lea.sflag [#allocation9], %s379_s3 }
  0x75   : > { %p3288_p1 = scmp.eq.s32.totalorder %s87_s14, 0  ;;  %s2894_s10 = scalar_lea.hbm %s3282_s23, 2048 }
  0x76   : > { %p2895_p7 = scmp.ne.s32.totalorder %s3282_s23, %s2894_s10  ;;  %p3863_p8 = scmp.ne.s32.totalorder %s3859_s13, 0 }
  0x77   : > { %s2899_s25 = scalar_lea.hbm %s3818_s2, 4096  ;;  %p2900_p4 = scmp.lt.u32.totalorder %s3282_s23, %s3818_s2 }
  0x78   : > { %p2896_p9 = pneg %p3863_p8  ;;  %p2901_p10 = scmp.lt.u32.totalorder %s2899_s25, %s2894_s10 }
  0x79   : > { %p2903_p11 = scmp.lt.u32.totalorder %s2894_s10, %s3282_s23 }
  0x7a   : > { %p2897_p12 = pnand %p2896_p9, %p2895_p7  ;;  %p2902_p5 = por %p2901_p10, %p2900_p4 }
  0x7c   : > { %p2898_p2 = pneg %p2897_p12  ;;  %p2904_p13 = por %p2903_p11, %p2902_p5 }
  0x7e   : > { %p2905_p0 = pnand %p2904_p13, %p2898_p2 }
  0x80   : > { %2908 = shalt.err (!%p2905_p0)
}
  0x81   : > { %s2909_s3 = scalar_lea.vmem %s3284_s9, 2048  ;;  %s3041_s5 = smov [#allocation8]  }
  0x82   : > { %p2910_p6 = scmp.ne.s32.totalorder %s3284_s9, %s2909_s3  ;;  %s2914_s7 = sshll.u32 %s3041_s5, 4  ;;  %s2915_s7 = int_to_ptr.vmem [resolvable:$false] %s2914_s7 }
  0x83   : > { %s2916_s18 = scalar_lea.vmem %s2915_s7, 4096  ;;  %p2917_p12 = scmp.lt.s32.totalorder %s3284_s9, %s2915_s7 }
  0x84   : > { %p2912_p3 = pnand %p2910_p6, %p2896_p9  ;;  %p2918_p4 = scmp.lt.s32.totalorder %s2916_s18, %s2909_s3 }
  0x86   : > { %p2913_p7 = pneg %p2912_p3  ;;  %p2919_p10 = por %p2918_p4, %p2917_p12 }
  0x88   : > { %p2920_p5 = pnand %p2919_p10, %p2913_p7 }
  0x8a   : > { %2923 = shalt.err (!%p2920_p5)
}
  0x8b   : > { %s3042_s28 = smov 128   ;;  %s3043_s14 = smov 8  }
  0x8c   : > { %2686 = dma.hbm_to_vmem [thread:$0]  (!%p3863_p8), %s3282_s23, 2048, %s3284_s9, %s3292_s27, %s3042_s28, %s3042_s28, %s3043_s14  }
  0x8d   : > { %s3864_s10 = sadd.s32 1, %s3014_s17  ;;  %p3865_p9 = scmp.ne.s32.totalorder %s3857_s29, 0 }
  0x8e   : > { %s3325_s24 = scalar_select %p3288_p1, %s3014_s17, %s3864_s10  }
  0x8f   : > { %444 = sbr.rel (%p3865_p9) target bundleno = 1393 (0x571), region = 60  ;;  %p3866_p2 = scmp.eq.s32.totalorder (!%p3865_p9), %s3150_s22, 0 }
  0x96   : > { %2985 = dma.done.wait (%p3866_p2), [#allocation6], 2048   ;;  %p3867_p11 = pmov %p3866_p2 }
  0x97   : > { %s450_s30 = sand.u32 1, %s3150_s22   ;;  %s3840_s13 = sand.u32 1, %s3010_s16  }
  0x98   : > { %2987 = vsyncadd (%p3867_p11), [#allocation6], 4294965248  ;;  %s2197_s9 = sshll.u32 %s3840_s13, 7  ;;  %s451_s23 = scalar_lea.sflag [#allocation9], %s450_s30 }
  0x99   : > { %s3337_s19 = scalar_lea.vmem [#allocation8], %s2197_s9  ;;  %p3868_p1 = scmp.ne.s32.totalorder %s3852_s26, 0 }
  0x9b   : > { %2989 = dma.done.wait (%p3868_p1), %s451_s23, 2048  }
  0x9c   : > { %2991 = vsyncadd (%p3868_p1), %s451_s23, 4294965248  ;;  %p3869_p8 = pmov %p3866_p2 }
  0x9d   : > { %p3870_p13 = pmov %p3866_p2 }
  0x9e   : > { %2993 = dma.done.wait (%p3869_p8), [#allocation9], 1024  }
  0x9f   : > { %2995 = vsyncadd (%p3870_p13), [#allocation9], 4294966272  ;;  %p3871_p0 = pmov %p3866_p2 }
  0xa1   : > { %2997 = dma.done.wait (%p3871_p0), [#allocation12], 1024   ;;  %p3872_p6 = pmov %p3871_p0 }
  0xa2   : > { %s3873_s29 = sld [smem:[#allocation21_spill]]  ;;  %s3874_s27 = sld [smem:[#allocation20_spill]] }
  0xa3   : > { %2999 = vsyncadd (%p3872_p6), [#allocation12], 4294966272  ;;  %s3875_s7 = sld [smem:[#allocation27_spill]]  ;;  %s3876_s10 = sld [smem:[#allocation25_spill]] }
  0xa4   : > { %s3371_s1 = scalar_lea.vmem [#allocation13], %s2197_s9 }
  0xa8   : > { %p522_p3 = scmp.lt.s32.totalorder %s3873_s29, 1  ;;  %s2205_s25 = sshll.u32 %s3874_s27, 1 }
  0xa9   : > { %p551_p7 = scmp.lt.s32.totalorder %s2205_s25, 3  ;;  %p2206_p4 = scmp.ne.s32.totalorder %s3874_s27, 0 }
  0xaa   : > { %s3910_s29 = smov (!%p522_p3, %s3873_s29), 1  ;;  %v3044_v0 = vmov (!%p2206_p4), 0.0  }
  0xab   : > { %s524_s26 = ssub.s32 1, %s3910_s29  ;;  %s3912_s25 = smov (!%p551_p7, %s2205_s25), 3  ;;  %561 = vst [vmem:[#allocation2] sm:$0xff] (!%p2206_p4), %v3044_v0  ;;  %562 = vst [vmem:[#allocation2 + $0x8] sm:$0xff] (!%p2206_p4), %v3044_v0 }
  0xac   : > { %s525_s4 = smul.u32 %s3874_s27, %s524_s26  ;;  %s553_s22 = scalar_lea.vmem %s3875_s7, %s3912_s25  ;;  %563 = vst [vmem:[#allocation2 + $0x10] sm:$0xff] (!%p2206_p4), %v3044_v0  ;;  %564 = vst [vmem:[#allocation2 + $0x18] sm:$0xff] (!%p2206_p4), %v3044_v0 }
  0xad   : > { %s3877_s29 = sld [smem:[#allocation26_spill]]  ;;  %560 = sbr.rel (%p2206_p4) target bundleno = 180 (0xb4), region = 80  ;;  %565 = vst [vmem:[#allocation2 + $0x20] sm:$0xff] (!%p2206_p4), %v3044_v0  ;;  %566 = vst [vmem:[#allocation2 + $0x28] sm:$0xff] (!%p2206_p4), %v3044_v0 }
  0xae   : > { %s2201_s12 = sshll.u32 %s525_s4, 5  ;;  %567 = vst [vmem:[#allocation2 + $0x30] sm:$0xff] (!%p2206_p4), %v3044_v0  ;;  %568 = vst [vmem:[#allocation2 + $0x38] sm:$0xff] (!%p2206_p4), %v3044_v0 }
  0xaf   : > { %p527_p12 = scmp.lt.s32.totalorder %s2201_s12, 63  ;;  %569 = vst [vmem:[#allocation2 + $0x40] sm:$0xff] (!%p2206_p4), %v3044_v0  ;;  %570 = vst [vmem:[#allocation2 + $0x48] sm:$0xff] (!%p2206_p4), %v3044_v0 }
  0xb0   : > { %571 = vst [vmem:[#allocation2 + $0x50] sm:$0xff] (!%p2206_p4), %v3044_v0  ;;  %572 = vst [vmem:[#allocation2 + $0x58] sm:$0xff] (!%p2206_p4), %v3044_v0 }
  0xb1   : > { %s3914_s12 = smov (!%p527_p12, %s2201_s12), 63  ;;  %573 = vst [vmem:[#allocation2 + $0x60] sm:$0xff] (!%p2206_p4), %v3044_v0  ;;  %574 = vst [vmem:[#allocation2 + $0x68] sm:$0xff] (!%p2206_p4), %v3044_v0 }
  0xb2   : > { %s2202_s18 = sshll.u32 %s3914_s12, 3  ;;  %575 = vst [vmem:[#allocation2 + $0x70] sm:$0xff] (!%p2206_p4), %v3044_v0  ;;  %576 = vst [vmem:[#allocation2 + $0x78] sm:$0xff] (!%p2206_p4), %v3044_v0 }
  0xb3   : > { %s3364_s30 = scalar_lea.vmem %s3876_s10, %s2202_s18  ;;  %s3369_s26 = scalar_lea.vmem %s3877_s29, %s2202_s18 }
  0xb4 PF: > { %s3878_s13 = sld [smem:[#allocation21_spill]] }
  0xba   : > { %p2207_p10 = scmp.ne.s32.totalorder %s3878_s13, 0 }
  0xbb   : > { %v597_v1 = vld [vmem:[%s3369_s26 + $0x80] sm:$0xff] (!%p2207_p10)  ;;  %v3045_v3 = vmov (!%p2207_p10), 0   ;;  %v598_v4 = vld [vmem:[%s3369_s26 + $0x88] sm:$0xff] (!%p2207_p10)  ;;  %v584_v6 = vld [vmem:[%s3369_s26 + $0x18] sm:$0xff] (!%p2207_p10)  ;;  %v613_v50 = vlaneseq (!%p2207_p10)  ;;  %v3046_v60 = vmov (!%p2207_p10), 1.0|1.0  }
  0xbc   : > { %580 = sbr.rel (%p2207_p10) target bundleno = 607 (0x25f), region = 84  ;;  %v581_v2 = vld [vmem:[%s3369_s26] sm:$0xff] (!%p2207_p10)  ;;  %2777 = vset.pattern.permute.xlu1 (!%p2207_p10), %v3045_v3  ;;  %2776 = vset.pattern.permute.xlu0 (!%p2207_p10), %v3045_v3  ;;  %v582_v5 = vld [vmem:[%s3369_s26 + $0x8] sm:$0xff] (!%p2207_p10)  ;;  %v583_v7 = vld [vmem:[%s3369_s26 + $0x10] sm:$0xff] (!%p2207_p10)  ;;  %s3881_s9 = sld [smem:[#allocation20_spill]] (!%p2207_p10) }
  0xbd   : > { %665 = vperm.xlu1 (!%p2207_p10), %2777, %v597_v1   ;;  %617 = vperm.xlu0 (!%p2207_p10), %2776, %v581_v2   ;;  %v600_v8 = vld [vmem:[%s3369_s26 + $0x98] sm:$0xff] (!%p2207_p10)  ;;  %v599_v9 = vld [vmem:[%s3369_s26 + $0x90] sm:$0xff] (!%p2207_p10)  ;;  %v2778_v10 = vld [vmem:[#allocation5 + $0x40] sm:$0xff] (!%p2207_p10)   ;;  %v3407_v51 = vand.u32 (!%p2207_p10), 127, %v613_v50 }
  0xbe   : > { %v2779_v11 = vld [vmem:[#allocation5] sm:$0xff] (!%p2207_p10)   ;;  %v586_v12 = vld [vmem:[%s3369_s26 + $0x28] sm:$0xff] (!%p2207_p10)  ;;  %2353 = vmatprep.subr.bf16.mxu0 (!%p2207_p10), %v2778_v10  ;;  %2625 = vmatprep.subr.bf16.mxu1 (!%p2207_p10), %v2778_v10  ;;  %v2782_v16 = vld [vmem:[#allocation5 + $0x50] sm:$0xff] (!%p2207_p10)  }
  0xbf   : > { %v2780_v13 = vld [vmem:[#allocation5 + $0x48] sm:$0xff] (!%p2207_p10)   ;;  %v585_v14 = vld [vmem:[%s3369_s26 + $0x20] sm:$0xff] (!%p2207_p10)  ;;  %2354 = vmatpush3.bf16.msra.mxu0 (!%p2207_p10), %v2779_v11  ;;  %2633 = vmatpush3.bf16.msra.mxu1 (!%p2207_p10), %v2779_v11  ;;  %v2783_v19 = vld [vmem:[#allocation5 + $0x10] sm:$0xff] (!%p2207_p10)   ;;  %v3410_v54 = vadd.s32 (!%p2207_p10), 128, %v3407_v51 }
  0xc0   : > { %v2781_v15 = vld [vmem:[#allocation5 + $0x8] sm:$0xff] (!%p2207_p10)   ;;  %2355 = vmatprep.subr.bf16.mxu0 (!%p2207_p10), %v2780_v13  ;;  %2626 = vmatprep.subr.bf16.mxu1 (!%p2207_p10), %v2780_v13  ;;  %v601_v18 = vld [vmem:[%s3369_s26 + $0xa0] sm:$0xff] (!%p2207_p10)  ;;  %v2784_v20 = vld [vmem:[#allocation5 + $0x58] sm:$0xff] (!%p2207_p10)  }
  0xc1   : > { %668 = vperm.xlu1 (!%p2207_p10), %2777, %v598_v4   ;;  %620 = vperm.xlu0 (!%p2207_p10), %2776, %v582_v5   ;;  %v602_v17 = vld [vmem:[%s3369_s26 + $0xa8] sm:$0xff] (!%p2207_p10)  ;;  %v588_v21 = vld [vmem:[%s3369_s26 + $0x38] sm:$0xff] (!%p2207_p10)  ;;  %v587_v22 = vld [vmem:[%s3369_s26 + $0x30] sm:$0xff] (!%p2207_p10) }
  0xc2   : > { %v2785_v23 = vld [vmem:[#allocation5 + $0x18] sm:$0xff] (!%p2207_p10)   ;;  %v2786_v24 = vld [vmem:[#allocation5 + $0x60] sm:$0xff] (!%p2207_p10)   ;;  %v603_v26 = vld [vmem:[%s3369_s26 + $0xb0] sm:$0xff] (!%p2207_p10)  ;;  %s2350_s27 = sshll.u32 (!%p2207_p10), %s3881_s9, 7 }
  0xc3   : > { %2356 = vmatpush3.bf16.msra.mxu0 %v2781_v15  ;;  %2634 = vmatpush3.bf16.msra.mxu1 %v2781_v15  ;;  %v604_v25 = vld [vmem:[%s3369_s26 + $0xb8] sm:$0xff]  ;;  %v2787_v27 = vld [vmem:[#allocation5 + $0x20] sm:$0xff]   ;;  %v2788_v28 = vld [vmem:[#allocation5 + $0x68] sm:$0xff]   ;;  %s3522_s4 = scalar_lea.vmem [#allocation3], %s2350_s27 }
  0xc4   : > { %2357 = vmatprep.subr.bf16.mxu0 %v2782_v16  ;;  %2627 = vmatprep.subr.bf16.mxu1 %v2782_v16  ;;  %v590_v29 = vld [vmem:[%s3369_s26 + $0x48] sm:$0xff]  ;;  %v589_v30 = vld [vmem:[%s3369_s26 + $0x40] sm:$0xff]  ;;  %v2790_v32 = vld [vmem:[#allocation5 + $0x70] sm:$0xff]  }
  0xc5   : > { %626 = vperm.xlu1 %2777, %v584_v6   ;;  %623 = vperm.xlu0 %2776, %v583_v7   ;;  %v2789_v31 = vld [vmem:[#allocation5 + $0x28] sm:$0xff]   ;;  %v605_v34 = vld [vmem:[%s3369_s26 + $0xc0] sm:$0xff]  ;;  %v2791_v35 = vld [vmem:[#allocation5 + $0x30] sm:$0xff]  }
  0xc6   : > { %v606_v33 = vld [vmem:[%s3369_s26 + $0xc8] sm:$0xff]  ;;  %v2792_v36 = vld [vmem:[#allocation5 + $0x78] sm:$0xff]   ;;  %v591_v38 = vld [vmem:[%s3369_s26 + $0x50] sm:$0xff] }
  0xc7   : > { %2358 = vmatpush3.bf16.msra.mxu0 %v2783_v19  ;;  %2635 = vmatpush3.bf16.msra.mxu1 %v2783_v19  ;;  %v592_v37 = vld [vmem:[%s3369_s26 + $0x58] sm:$0xff]  ;;  %v607_v41 = vld [vmem:[%s3369_s26 + $0xd0] sm:$0xff]  ;;  %v594_v42 = vld [vmem:[%s3369_s26 + $0x68] sm:$0xff] }
  0xc8   : > { %2359 = vmatprep.subr.bf16.mxu0 %v2784_v20  ;;  %2628 = vmatprep.subr.bf16.mxu1 %v2784_v20  ;;  %v2793_v39 = vld [vmem:[#allocation5 + $0x38] sm:$0xff]   ;;  %v593_v43 = vld [vmem:[%s3369_s26 + $0x60] sm:$0xff]  ;;  %v610_v44 = vld [vmem:[%s3369_s26 + $0xe8] sm:$0xff] }
  0xc9   : > { %674 = vperm.xlu1 %2777, %v600_v8   ;;  %671 = vperm.xlu0 %2776, %v599_v9   ;;  %v608_v40 = vld [vmem:[%s3369_s26 + $0xd8] sm:$0xff]  ;;  %v609_v45 = vld [vmem:[%s3369_s26 + $0xe0] sm:$0xff]  ;;  %v595_v47 = vld [vmem:[%s3369_s26 + $0x70] sm:$0xff] }
  0xca   : > { %v596_v46 = vld [vmem:[%s3369_s26 + $0x78] sm:$0xff]  ;;  %v611_v49 = vld [vmem:[%s3369_s26 + $0xf0] sm:$0xff] }
  0xcb   : > { %2360 = vmatpush3.bf16.msra.mxu0 %v2785_v23  ;;  %2636 = vmatpush3.bf16.msra.mxu1 %v2785_v23  ;;  %v612_v48 = vld [vmem:[%s3369_s26 + $0xf8] sm:$0xff] }
  0xcc   : > { %2361 = vmatprep.subr.bf16.mxu0 %v2786_v24  ;;  %2629 = vmatprep.subr.bf16.mxu1 %v2786_v24 }
  0xcd   : > { %632 = vperm.xlu1 %2777, %v586_v12   ;;  %629 = vperm.xlu0 %2776, %v585_v14  }
  0xcf   : > { %2362 = vmatpush3.bf16.msra.mxu0 %v2787_v27  ;;  %2637 = vmatpush3.bf16.msra.mxu1 %v2787_v27 }
  0xd0   : > { %2363 = vmatprep.subr.bf16.mxu0 %v2788_v28  ;;  %2630 = vmatprep.subr.bf16.mxu1 %v2788_v28  ;;  %v920_v28 = vld [vmem:[%s3364_s30 + $0x80] sm:$0xff] }
  0xd1   : > { %680 = vperm.xlu1 %2777, %v602_v17   ;;  %677 = vperm.xlu0 %2776, %v601_v18  }
  0xd3   : > { %2364 = vmatpush3.bf16.msra.mxu0 %v2789_v31  ;;  %2638 = vmatpush3.bf16.msra.mxu1 %v2789_v31 }
  0xd4   : > { %2365 = vmatprep.subr.bf16.mxu0 %v2790_v32  ;;  %2631 = vmatprep.subr.bf16.mxu1 %v2790_v32 }
  0xd5   : > { %638 = vperm.xlu1 %2777, %v588_v21   ;;  %635 = vperm.xlu0 %2776, %v587_v22  }
  0xd7   : > { %2366 = vmatpush3.bf16.msra.mxu0 %v2791_v35  ;;  %2639 = vmatpush3.bf16.msra.mxu1 %v2791_v35 }
  0xd8   : > { %2367 = vmatprep.subr.bf16.mxu0 %v2792_v36  ;;  %2632 = vmatprep.subr.bf16.mxu1 %v2792_v36 }
  0xd9   : > { %686 = vperm.xlu1 %2777, %v604_v25   ;;  %683 = vperm.xlu0 %2776, %v603_v26   ;;  %v904_v25 = vld [vmem:[%s3364_s30] sm:$0xff] }
  0xdb   : > { %2368 = vmatpush3.bf16.msra.mxu0 %v2793_v39  ;;  %2640 = vmatpush3.bf16.msra.mxu1 %v2793_v39 }
  0xdd   : > { %644 = vperm.xlu1 %2777, %v590_v29   ;;  %641 = vperm.xlu0 %2776, %v589_v30  }
  0xe1   : > { %692 = vperm.xlu1 %2777, %v606_v33   ;;  %689 = vperm.xlu0 %2776, %v605_v34   ;;  %v905_v33 = vld [vmem:[%s3364_s30 + $0x8] sm:$0xff] }
  0xe5   : > { %650 = vperm.xlu1 %2777, %v592_v37   ;;  %647 = vperm.xlu0 %2776, %v591_v38   ;;  %v921_v37 = vld [vmem:[%s3364_s30 + $0x88] sm:$0xff] }
  0xe9   : > { %698 = vperm.xlu1 %2777, %v608_v40   ;;  %695 = vperm.xlu0 %2776, %v607_v41  }
  0xed   : > { %656 = vperm.xlu1 %2777, %v594_v42   ;;  %653 = vperm.xlu0 %2776, %v593_v43  }
  0xf1   : > { %704 = vperm.xlu1 %2777, %v610_v44   ;;  %701 = vperm.xlu0 %2776, %v609_v45  }
  0xf5   : > { %662 = vperm.xlu1 %2777, %v596_v46   ;;  %659 = vperm.xlu0 %2776, %v595_v47  }
  0xf9   : > { %710 = vperm.xlu1 %2777, %v612_v48   ;;  %707 = vperm.xlu0 %2776, %v611_v49   ;;  %v906_v49 = vld [vmem:[%s3364_s30 + $0x10] sm:$0xff] }
 0x13c   : > { %v666_v52 = vpop.permute.xlu1 %665  ;;  %v618_v53 = vpop.permute.xlu0 %617 }
 0x13d   : > { %vm744_vm0 = vcmp.eq.s32.totalorder %v3407_v51, %v666_v52  ;;  %vm712_vm4 = vcmp.eq.s32.totalorder %v3407_v51, %v618_v53  ;;  %vm713_vm8 = vcmp.eq.s32.totalorder %v3410_v54, %v618_v53  ;;  %vm745_vm10 = vcmp.eq.s32.totalorder %v3410_v54, %v666_v52  ;;  %v922_v53 = vld [vmem:[%s3364_s30 + $0x90] sm:$0xff] }
 0x140   : > { %v669_v55 = vpop.permute.xlu1 %668  ;;  %v621_v56 = vpop.permute.xlu0 %620 }
 0x141   : > { %vm746_vm1 = vcmp.eq.s32.totalorder %v3407_v51, %v669_v55  ;;  %vm714_vm2 = vcmp.eq.s32.totalorder %v3407_v51, %v621_v56  ;;  %vm715_vm3 = vcmp.eq.s32.totalorder %v3410_v54, %v621_v56  ;;  %vm747_vm6 = vcmp.eq.s32.totalorder %v3410_v54, %v669_v55 }
 0x142   : > { %vm3417_vm5 = vmpackc.low %vm746_vm1, %vm744_vm0 }
 0x143   : > { %vm2226_vm7 = vmpackc.low %vm714_vm2, %vm712_vm4 }
 0x144   : > { %vm2224_vm9 = vmpackc.low %vm715_vm3, %vm713_vm8  ;;  %v627_v58 = vpop.permute.xlu1 %626  ;;  %v624_v59 = vpop.permute.xlu0 %623 }
 0x145   : > { %2225 = vmatprep.mubr.msk.bf16.mxu0 %vm2224_vm9, %v3046_v60  ;;  %vm2256_vm11 = vmpackc.low %vm747_vm6, %vm745_vm10  ;;  %vm719_vm12 = vcmp.eq.s32.totalorder %v3410_v54, %v627_v58  ;;  %vm717_vm13 = vcmp.eq.s32.totalorder %v3410_v54, %v624_v59  ;;  %vm718_vm3 = vcmp.eq.s32.totalorder %v3407_v51, %v627_v58  ;;  %vm716_vm4 = vcmp.eq.s32.totalorder %v3407_v51, %v624_v59  ;;  %v907_v59 = vld [vmem:[%s3364_s30 + $0x18] sm:$0xff] }
 0x146   : > { %2257 = vmatprep.mubr.msk.bf16.mxu1 %vm2256_vm11, %v3046_v60  ;;  %2227 = vmatmul.mubr.msk.bf16.vlgmr.msra.gmra.mrb[0].mxu0 %vm2226_vm7, %v3046_v60  ;;  %vm2228_vm14 = vmpackc.low %vm719_vm12, %vm717_vm13 }
 0x147   : > { %2259 = vmatmul.mubr.msk.bf16.vlgmr.msra.gmra.mrb[0].mxu1 %vm3417_vm5, %v3046_v60  ;;  %2229 = vmatprep.mubr.msk.bf16.mxu0 %vm2228_vm14, %v3046_v60  ;;  %vm2230_vm7 = vmpackc.low %vm718_vm3, %vm716_vm4 }
 0x148   : > { %v675_v61 = vpop.permute.xlu1 %674  ;;  %v672_v62 = vpop.permute.xlu0 %671 }
 0x149   : > { %vm750_vm15 = vcmp.eq.s32.totalorder %v3407_v51, %v675_v61  ;;  %vm751_vm0 = vcmp.eq.s32.totalorder %v3410_v54, %v675_v61  ;;  %vm748_vm1 = vcmp.eq.s32.totalorder %v3407_v51, %v672_v62  ;;  %vm749_vm2 = vcmp.eq.s32.totalorder %v3410_v54, %v672_v62 }
 0x14a   : > { %vm2260_vm6 = vmpackc.low %vm751_vm0, %vm749_vm2 }
 0x14b   : > { %2261 = vmatprep.mubr.msk.bf16.mxu1 %vm2260_vm6, %v3046_v60  ;;  %vm2262_vm5 = vmpackc.low %vm750_vm15, %vm748_vm1 }
 0x14c   : > { %v633_v63 = vpop.permute.xlu1 %632  ;;  %v630_v0 = vpop.permute.xlu0 %629 }
 0x14d   : > { %vm723_vm8 = vcmp.eq.s32.totalorder %v3410_v54, %v633_v63  ;;  %vm721_vm9 = vcmp.eq.s32.totalorder %v3410_v54, %v630_v0  ;;  %vm722_vm15 = vcmp.eq.s32.totalorder %v3407_v51, %v633_v63  ;;  %vm720_vm0 = vcmp.eq.s32.totalorder %v3407_v51, %v630_v0  ;;  %v923_v63 = vld [vmem:[%s3364_s30 + $0x98] sm:$0xff] }
 0x14e   : > { %2231 = vmatmul.mubr.msk.bf16.gmra.mrb[4].mxu0 %vm2230_vm7, %v3046_v60  ;;  %vm2232_vm10 = vmpackc.low %vm723_vm8, %vm721_vm9 }
 0x14f   : > { %2263 = vmatmul.mubr.msk.bf16.gmra.mrb[4].mxu1 %vm2262_vm5, %v3046_v60  ;;  %2233 = vmatprep.mubr.msk.bf16.mxu0 %vm2232_vm10, %v3046_v60  ;;  %vm2234_vm3 = vmpackc.low %vm722_vm15, %vm720_vm0 }
 0x150   : > { %v681_v1 = vpop.permute.xlu1 %680  ;;  %v678_v2 = vpop.permute.xlu0 %677 }
 0x151   : > { %vm754_vm11 = vcmp.eq.s32.totalorder %v3407_v51, %v681_v1  ;;  %vm755_vm12 = vcmp.eq.s32.totalorder %v3410_v54, %v681_v1  ;;  %vm752_vm13 = vcmp.eq.s32.totalorder %v3407_v51, %v678_v2  ;;  %vm753_vm14 = vcmp.eq.s32.totalorder %v3410_v54, %v678_v2 }
 0x152   : > { %vm2264_vm1 = vmpackc.low %vm755_vm12, %vm753_vm14 }
 0x153   : > { %2265 = vmatprep.mubr.msk.bf16.mxu1 %vm2264_vm1, %v3046_v60  ;;  %vm2266_vm2 = vmpackc.low %vm754_vm11, %vm752_vm13 }
 0x154   : > { %v639_v3 = vpop.permute.xlu1 %638  ;;  %v636_v4 = vpop.permute.xlu0 %635 }
 0x155   : > { %vm727_vm4 = vcmp.eq.s32.totalorder %v3410_v54, %v639_v3  ;;  %vm725_vm6 = vcmp.eq.s32.totalorder %v3410_v54, %v636_v4  ;;  %vm726_vm11 = vcmp.eq.s32.totalorder %v3407_v51, %v639_v3  ;;  %vm724_vm12 = vcmp.eq.s32.totalorder %v3407_v51, %v636_v4 }
 0x156   : > { %2235 = vmatmul.mubr.msk.bf16.gmra.mrb[8].mxu0 %vm2234_vm3, %v3046_v60  ;;  %vm2236_vm5 = vmpackc.low %vm727_vm4, %vm725_vm6 }
 0x157   : > { %2267 = vmatmul.mubr.msk.bf16.gmra.mrb[8].mxu1 %vm2266_vm2, %v3046_v60  ;;  %2237 = vmatprep.mubr.msk.bf16.mxu0 %vm2236_vm5, %v3046_v60  ;;  %vm2238_vm15 = vmpackc.low %vm726_vm11, %vm724_vm12 }
 0x158   : > { %v687_v5 = vpop.permute.xlu1 %686  ;;  %v684_v6 = vpop.permute.xlu0 %683 }
 0x159   : > { %vm758_vm7 = vcmp.eq.s32.totalorder %v3407_v51, %v687_v5  ;;  %vm759_vm8 = vcmp.eq.s32.totalorder %v3410_v54, %v687_v5  ;;  %vm756_vm9 = vcmp.eq.s32.totalorder %v3407_v51, %v684_v6  ;;  %vm757_vm10 = vcmp.eq.s32.totalorder %v3410_v54, %v684_v6 }
 0x15a   : > { %vm2268_vm13 = vmpackc.low %vm759_vm8, %vm757_vm10 }
 0x15b   : > { %2269 = vmatprep.mubr.msk.bf16.mxu1 %vm2268_vm13, %v3046_v60  ;;  %vm2270_vm14 = vmpackc.low %vm758_vm7, %vm756_vm9 }
 0x15c   : > { %v645_v7 = vpop.permute.xlu1 %644  ;;  %v642_v8 = vpop.permute.xlu0 %641 }
 0x15d   : > { %vm731_vm0 = vcmp.eq.s32.totalorder %v3410_v54, %v645_v7  ;;  %vm729_vm1 = vcmp.eq.s32.totalorder %v3410_v54, %v642_v8  ;;  %vm730_vm7 = vcmp.eq.s32.totalorder %v3407_v51, %v645_v7  ;;  %vm728_vm8 = vcmp.eq.s32.totalorder %v3407_v51, %v642_v8 }
 0x15e   : > { %2239 = vmatmul.mubr.msk.bf16.gmra.mrb[12].mxu0 %vm2238_vm15, %v3046_v60  ;;  %vm2240_vm2 = vmpackc.low %vm731_vm0, %vm729_vm1 }
 0x15f   : > { %2271 = vmatmul.mubr.msk.bf16.gmra.mrb[12].mxu1 %vm2270_vm14, %v3046_v60  ;;  %2241 = vmatprep.mubr.msk.bf16.mxu0 %vm2240_vm2, %v3046_v60  ;;  %vm2242_vm11 = vmpackc.low %vm730_vm7, %vm728_vm8 }
 0x160   : > { %v693_v9 = vpop.permute.xlu1 %692  ;;  %v690_v10 = vpop.permute.xlu0 %689 }
 0x161   : > { %vm762_vm3 = vcmp.eq.s32.totalorder %v3407_v51, %v693_v9  ;;  %vm763_vm4 = vcmp.eq.s32.totalorder %v3410_v54, %v693_v9  ;;  %vm760_vm6 = vcmp.eq.s32.totalorder %v3407_v51, %v690_v10  ;;  %vm761_vm5 = vcmp.eq.s32.totalorder %v3410_v54, %v690_v10 }
 0x162   : > { %vm2272_vm9 = vmpackc.low %vm763_vm4, %vm761_vm5 }
 0x163   : > { %2273 = vmatprep.mubr.msk.bf16.mxu1 %vm2272_vm9, %v3046_v60  ;;  %vm2274_vm10 = vmpackc.low %vm762_vm3, %vm760_vm6 }
 0x164   : > { %v651_v11 = vpop.permute.xlu1 %650  ;;  %v648_v12 = vpop.permute.xlu0 %647 }
 0x165   : > { %vm735_vm12 = vcmp.eq.s32.totalorder %v3410_v54, %v651_v11  ;;  %vm733_vm13 = vcmp.eq.s32.totalorder %v3410_v54, %v648_v12  ;;  %vm734_vm3 = vcmp.eq.s32.totalorder %v3407_v51, %v651_v11  ;;  %vm732_vm4 = vcmp.eq.s32.totalorder %v3407_v51, %v648_v12  ;;  %v908_v11 = vld [vmem:[%s3364_s30 + $0x20] sm:$0xff] }
 0x166   : > { %2243 = vmatmul.mubr.msk.bf16.gmra.mrb[16].mxu0 %vm2242_vm11, %v3046_v60  ;;  %vm2244_vm14 = vmpackc.low %vm735_vm12, %vm733_vm13 }
 0x167   : > { %2275 = vmatmul.mubr.msk.bf16.gmra.mrb[16].mxu1 %vm2274_vm10, %v3046_v60  ;;  %2245 = vmatprep.mubr.msk.bf16.mxu0 %vm2244_vm14, %v3046_v60  ;;  %vm2246_vm7 = vmpackc.low %vm734_vm3, %vm732_vm4 }
 0x168   : > { %v699_v13 = vpop.permute.xlu1 %698  ;;  %v696_v14 = vpop.permute.xlu0 %695 }
 0x169   : > { %vm766_vm15 = vcmp.eq.s32.totalorder %v3407_v51, %v699_v13  ;;  %vm767_vm0 = vcmp.eq.s32.totalorder %v3410_v54, %v699_v13  ;;  %vm764_vm1 = vcmp.eq.s32.totalorder %v3407_v51, %v696_v14  ;;  %vm765_vm2 = vcmp.eq.s32.totalorder %v3410_v54, %v696_v14 }
 0x16a   : > { %vm2276_vm6 = vmpackc.low %vm767_vm0, %vm765_vm2 }
 0x16b   : > { %2277 = vmatprep.mubr.msk.bf16.mxu1 %vm2276_vm6, %v3046_v60  ;;  %vm2278_vm5 = vmpackc.low %vm766_vm15, %vm764_vm1 }
 0x16c   : > { %v657_v15 = vpop.permute.xlu1 %656  ;;  %v654_v16 = vpop.permute.xlu0 %653 }
 0x16d   : > { %vm739_vm8 = vcmp.eq.s32.totalorder %v3410_v54, %v657_v15  ;;  %vm737_vm9 = vcmp.eq.s32.totalorder %v3410_v54, %v654_v16  ;;  %vm738_vm15 = vcmp.eq.s32.totalorder %v3407_v51, %v657_v15  ;;  %vm736_vm0 = vcmp.eq.s32.totalorder %v3407_v51, %v654_v16  ;;  %v924_v15 = vld [vmem:[%s3364_s30 + $0xa0] sm:$0xff] }
 0x16e   : > { %2247 = vmatmul.mubr.msk.bf16.gmra.mrb[20].mxu0 %vm2246_vm7, %v3046_v60  ;;  %vm2248_vm10 = vmpackc.low %vm739_vm8, %vm737_vm9 }
 0x16f   : > { %2279 = vmatmul.mubr.msk.bf16.gmra.mrb[20].mxu1 %vm2278_vm5, %v3046_v60  ;;  %2249 = vmatprep.mubr.msk.bf16.mxu0 %vm2248_vm10, %v3046_v60  ;;  %vm2250_vm3 = vmpackc.low %vm738_vm15, %vm736_vm0 }
 0x170   : > { %v705_v17 = vpop.permute.xlu1 %704  ;;  %v702_v18 = vpop.permute.xlu0 %701 }
 0x171   : > { %vm770_vm11 = vcmp.eq.s32.totalorder %v3407_v51, %v705_v17  ;;  %vm771_vm12 = vcmp.eq.s32.totalorder %v3410_v54, %v705_v17  ;;  %vm768_vm13 = vcmp.eq.s32.totalorder %v3407_v51, %v702_v18  ;;  %vm769_vm14 = vcmp.eq.s32.totalorder %v3410_v54, %v702_v18 }
 0x172   : > { %vm2280_vm1 = vmpackc.low %vm771_vm12, %vm769_vm14 }
 0x173   : > { %2281 = vmatprep.mubr.msk.bf16.mxu1 %vm2280_vm1, %v3046_v60  ;;  %vm2282_vm2 = vmpackc.low %vm770_vm11, %vm768_vm13 }
 0x174   : > { %v663_v19 = vpop.permute.xlu1 %662  ;;  %v660_v20 = vpop.permute.xlu0 %659 }
 0x175   : > { %vm743_vm4 = vcmp.eq.s32.totalorder %v3410_v54, %v663_v19  ;;  %vm741_vm6 = vcmp.eq.s32.totalorder %v3410_v54, %v660_v20  ;;  %vm742_vm11 = vcmp.eq.s32.totalorder %v3407_v51, %v663_v19  ;;  %vm740_vm12 = vcmp.eq.s32.totalorder %v3407_v51, %v660_v20 }
 0x176   : > { %2251 = vmatmul.mubr.msk.bf16.gmra.mrb[24].mxu0 %vm2250_vm3, %v3046_v60  ;;  %vm2252_vm5 = vmpackc.low %vm743_vm4, %vm741_vm6 }
 0x177   : > { %2283 = vmatmul.mubr.msk.bf16.gmra.mrb[24].mxu1 %vm2282_vm2, %v3046_v60  ;;  %2253 = vmatprep.mubr.msk.bf16.mxu0 %vm2252_vm5, %v3046_v60  ;;  %vm2254_vm15 = vmpackc.low %vm742_vm11, %vm740_vm12 }
 0x178   : > { %v711_v21 = vpop.permute.xlu1 %710  ;;  %v708_v22 = vpop.permute.xlu0 %707 }
 0x179   : > { %vm774_vm7 = vcmp.eq.s32.totalorder %v3407_v51, %v711_v21  ;;  %vm775_vm8 = vcmp.eq.s32.totalorder %v3410_v54, %v711_v21  ;;  %vm772_vm9 = vcmp.eq.s32.totalorder %v3407_v51, %v708_v22  ;;  %vm773_vm10 = vcmp.eq.s32.totalorder %v3410_v54, %v708_v22  ;;  %v909_v21 = vld [vmem:[%s3364_s30 + $0x28] sm:$0xff] }
 0x17a   : > { %vm2284_vm13 = vmpackc.low %vm775_vm8, %vm773_vm10 }
 0x17b   : > { %2285 = vmatprep.mubr.msk.bf16.mxu1 %vm2284_vm13, %v3046_v60  ;;  %vm2286_vm14 = vmpackc.low %vm774_vm7, %vm772_vm9 }
 0x17e   : > { %2255 = vmatmul.mubr.msk.bf16.gmra.mrb[28].mxu0 %vm2254_vm15, %v3046_v60 }
 0x17f   : > { %2287 = vmatmul.mubr.msk.bf16.gmra.mrb[28].mxu1 %vm2286_vm14, %v3046_v60 }
 0x219   : > { %v2369_v23 = vpop.f32.mrb[0].mxu0 }
 0x21a   : > { %v2417_v24 = vpop.f32.mrb[0].mxu1  ;;  %v2370_v26 = vpop.f32.mrb[1].mxu0 }
 0x21b   : > { %v2371_v27 = vadd.f32 %v2370_v26, %v2369_v23  ;;  %v2418_v29 = vpop.f32.mrb[1].mxu1  ;;  %v2372_v30 = vpop.f32.mrb[2].mxu0 }
 0x21c   : > { %v2419_v31 = vadd.f32 %v2418_v29, %v2417_v24  ;;  %v2420_v32 = vpop.f32.mrb[2].mxu1  ;;  %v2373_v34 = vpop.f32.mrb[3].mxu0 }
 0x21d   : > { %v1067_v35 = vadd.f32 %v2371_v27, %v904_v25  ;;  %v2374_v36 = vadd.f32 %v2373_v34, %v2372_v30  ;;  %v2421_v38 = vpop.f32.mrb[3].mxu1  ;;  %v925_v25 = vld [vmem:[%s3364_s30 + $0xa8] sm:$0xff] }
 0x21e   : > { %v1131_v39 = vadd.f32 %v2419_v31, %v920_v28  ;;  %v2422_v40 = vadd.f32 %v2421_v38, %v2420_v32 }
 0x21f   : > { %v1070_v41 = vadd.f32 %v2374_v36, %v905_v33  ;;  %v1193_v43 = vmax.f32 %v1067_v35, 0.0 }
 0x220   : > { %v1134_v42 = vadd.f32 %v2422_v40, %v921_v37  ;;  %v1209_v46 = vmax.f32 %v1131_v39, 0.0  ;;  %v910_v37 = vld [vmem:[%s3364_s30 + $0x30] sm:$0xff] }
 0x221   : > { %v1194_v44 = vmax.f32 %v1070_v41, 0.0  ;;  %v2375_v45 = vpop.f32.mrb[4].mxu0  ;;  %v926_v41 = vld [vmem:[%s3364_s30 + $0xb0] sm:$0xff] }
 0x222   : > { %v1210_v47 = vmax.f32 %v1134_v42, 0.0  ;;  %v2423_v48 = vpop.f32.mrb[4].mxu1  ;;  %v2376_v50 = vpop.f32.mrb[5].mxu0 }
 0x223   : > { %v1225_v51 = vpack.c.bf16 %v1194_v44, %v1193_v43  ;;  %v2377_v52 = vadd.f32 %v2376_v50, %v2375_v45  ;;  %v2424_v54 = vpop.f32.mrb[5].mxu1  ;;  %v2378_v55 = vpop.f32.mrb[6].mxu0 }
 0x224   : > { %v1233_v56 = vpack.c.bf16 %v1210_v47, %v1209_v46  ;;  %v2425_v57 = vadd.f32 %v2424_v54, %v2423_v48  ;;  %v2426_v58 = vpop.f32.mrb[6].mxu1  ;;  %v2379_v60 = vpop.f32.mrb[7].mxu0  ;;  %v911_v47 = vld [vmem:[%s3364_s30 + $0x38] sm:$0xff] }
 0x225   : > { %1244 = vst [vmem:[%s3522_s4] sm:$0xff] %v1225_v51  ;;  %v1075_v61 = vadd.f32 %v2377_v52, %v906_v49  ;;  %v2380_v62 = vadd.f32 %v2379_v60, %v2378_v55  ;;  %v2427_v0 = vpop.f32.mrb[7].mxu1  ;;  %v927_v51 = vld [vmem:[%s3364_s30 + $0xb8] sm:$0xff] }
 0x226   : > { %1252 = vst [vmem:[%s3522_s4 + $0x40] sm:$0xff] %v1233_v56  ;;  %v1139_v1 = vadd.f32 %v2425_v57, %v922_v53  ;;  %v2428_v2 = vadd.f32 %v2427_v0, %v2426_v58 }
 0x227   : > { %v1078_v3 = vadd.f32 %v2380_v62, %v907_v59  ;;  %v1195_v5 = vmax.f32 %v1075_v61, 0.0 }
 0x228   : > { %v1142_v4 = vadd.f32 %v2428_v2, %v923_v63  ;;  %v1211_v8 = vmax.f32 %v1139_v1, 0.0  ;;  %v912_v63 = vld [vmem:[%s3364_s30 + $0x40] sm:$0xff] }
 0x229   : > { %v1196_v6 = vmax.f32 %v1078_v3, 0.0  ;;  %v2381_v7 = vpop.f32.mrb[8].mxu0  ;;  %v928_v3 = vld [vmem:[%s3364_s30 + $0xc0] sm:$0xff] }
 0x22a   : > { %v1212_v9 = vmax.f32 %v1142_v4, 0.0  ;;  %v2429_v10 = vpop.f32.mrb[8].mxu1  ;;  %v2382_v12 = vpop.f32.mrb[9].mxu0 }
 0x22b   : > { %v1226_v13 = vpack.c.bf16 %v1196_v6, %v1195_v5  ;;  %v2383_v14 = vadd.f32 %v2382_v12, %v2381_v7  ;;  %v2430_v16 = vpop.f32.mrb[9].mxu1  ;;  %v2384_v17 = vpop.f32.mrb[10].mxu0 }
 0x22c   : > { %v1234_v18 = vpack.c.bf16 %v1212_v9, %v1211_v8  ;;  %v2431_v19 = vadd.f32 %v2430_v16, %v2429_v10  ;;  %v2432_v20 = vpop.f32.mrb[10].mxu1  ;;  %v2385_v22 = vpop.f32.mrb[11].mxu0  ;;  %v913_v9 = vld [vmem:[%s3364_s30 + $0x48] sm:$0xff] }
 0x22d   : > { %1245 = vst [vmem:[%s3522_s4 + $0x8] sm:$0xff] %v1226_v13  ;;  %v1083_v23 = vadd.f32 %v2383_v14, %v908_v11  ;;  %v2386_v24 = vadd.f32 %v2385_v22, %v2384_v17  ;;  %v2433_v26 = vpop.f32.mrb[11].mxu1  ;;  %v929_v13 = vld [vmem:[%s3364_s30 + $0xc8] sm:$0xff] }
 0x22e   : > { %1253 = vst [vmem:[%s3522_s4 + $0x48] sm:$0xff] %v1234_v18  ;;  %v1147_v27 = vadd.f32 %v2431_v19, %v924_v15  ;;  %v2434_v28 = vadd.f32 %v2433_v26, %v2432_v20 }
 0x22f   : > { %v1086_v29 = vadd.f32 %v2386_v24, %v909_v21  ;;  %v1197_v31 = vmax.f32 %v1083_v23, 0.0 }
 0x230   : > { %v1150_v30 = vadd.f32 %v2434_v28, %v925_v25  ;;  %v1213_v34 = vmax.f32 %v1147_v27, 0.0  ;;  %v914_v25 = vld [vmem:[%s3364_s30 + $0x50] sm:$0xff] }
 0x231   : > { %v1198_v32 = vmax.f32 %v1086_v29, 0.0  ;;  %v2387_v33 = vpop.f32.mrb[12].mxu0  ;;  %v930_v29 = vld [vmem:[%s3364_s30 + $0xd0] sm:$0xff] }
 0x232   : > { %v1214_v35 = vmax.f32 %v1150_v30, 0.0  ;;  %v2435_v36 = vpop.f32.mrb[12].mxu1  ;;  %v2388_v38 = vpop.f32.mrb[13].mxu0 }
 0x233   : > { %v1227_v39 = vpack.c.bf16 %v1198_v32, %v1197_v31  ;;  %v2389_v40 = vadd.f32 %v2388_v38, %v2387_v33  ;;  %v2436_v42 = vpop.f32.mrb[13].mxu1  ;;  %v2390_v43 = vpop.f32.mrb[14].mxu0 }
 0x234   : > { %v1235_v44 = vpack.c.bf16 %v1214_v35, %v1213_v34  ;;  %v2437_v45 = vadd.f32 %v2436_v42, %v2435_v36  ;;  %v2438_v46 = vpop.f32.mrb[14].mxu1  ;;  %v2391_v48 = vpop.f32.mrb[15].mxu0  ;;  %v915_v35 = vld [vmem:[%s3364_s30 + $0x58] sm:$0xff] }
 0x235   : > { %1246 = vst [vmem:[%s3522_s4 + $0x10] sm:$0xff] %v1227_v39  ;;  %v1091_v49 = vadd.f32 %v2389_v40, %v910_v37  ;;  %v2392_v50 = vadd.f32 %v2391_v48, %v2390_v43  ;;  %v2439_v52 = vpop.f32.mrb[15].mxu1  ;;  %v931_v39 = vld [vmem:[%s3364_s30 + $0xd8] sm:$0xff] }
 0x236   : > { %1254 = vst [vmem:[%s3522_s4 + $0x50] sm:$0xff] %v1235_v44  ;;  %v1155_v53 = vadd.f32 %v2437_v45, %v926_v41  ;;  %v2440_v54 = vadd.f32 %v2439_v52, %v2438_v46 }
 0x237   : > { %v1094_v55 = vadd.f32 %v2392_v50, %v911_v47  ;;  %v1199_v57 = vmax.f32 %v1091_v49, 0.0 }
 0x238   : > { %v1158_v56 = vadd.f32 %v2440_v54, %v927_v51  ;;  %v1215_v60 = vmax.f32 %v1155_v53, 0.0  ;;  %v916_v51 = vld [vmem:[%s3364_s30 + $0x60] sm:$0xff] }
 0x239   : > { %v1200_v58 = vmax.f32 %v1094_v55, 0.0  ;;  %v2393_v59 = vpop.f32.mrb[16].mxu0  ;;  %v932_v55 = vld [vmem:[%s3364_s30 + $0xe0] sm:$0xff] }
 0x23a   : > { %v1216_v61 = vmax.f32 %v1158_v56, 0.0  ;;  %v2441_v62 = vpop.f32.mrb[16].mxu1  ;;  %v2394_v0 = vpop.f32.mrb[17].mxu0 }
 0x23b   : > { %v1228_v1 = vpack.c.bf16 %v1200_v58, %v1199_v57  ;;  %v2395_v2 = vadd.f32 %v2394_v0, %v2393_v59  ;;  %v2442_v4 = vpop.f32.mrb[17].mxu1  ;;  %v2396_v5 = vpop.f32.mrb[18].mxu0 }
 0x23c   : > { %v1236_v6 = vpack.c.bf16 %v1216_v61, %v1215_v60  ;;  %v2443_v7 = vadd.f32 %v2442_v4, %v2441_v62  ;;  %v2444_v8 = vpop.f32.mrb[18].mxu1  ;;  %v2397_v10 = vpop.f32.mrb[19].mxu0  ;;  %v917_v61 = vld [vmem:[%s3364_s30 + $0x68] sm:$0xff] }
 0x23d   : > { %1247 = vst [vmem:[%s3522_s4 + $0x18] sm:$0xff] %v1228_v1  ;;  %v1099_v11 = vadd.f32 %v2395_v2, %v912_v63  ;;  %v2398_v12 = vadd.f32 %v2397_v10, %v2396_v5  ;;  %v2445_v14 = vpop.f32.mrb[19].mxu1  ;;  %v933_v1 = vld [vmem:[%s3364_s30 + $0xe8] sm:$0xff] }
 0x23e   : > { %1255 = vst [vmem:[%s3522_s4 + $0x58] sm:$0xff] %v1236_v6  ;;  %v1163_v15 = vadd.f32 %v2443_v7, %v928_v3  ;;  %v2446_v16 = vadd.f32 %v2445_v14, %v2444_v8 }
 0x23f   : > { %v1102_v17 = vadd.f32 %v2398_v12, %v913_v9  ;;  %v1201_v19 = vmax.f32 %v1099_v11, 0.0 }
 0x240   : > { %v1166_v18 = vadd.f32 %v2446_v16, %v929_v13  ;;  %v1217_v22 = vmax.f32 %v1163_v15, 0.0  ;;  %v918_v13 = vld [vmem:[%s3364_s30 + $0x70] sm:$0xff] }
 0x241   : > { %v1202_v20 = vmax.f32 %v1102_v17, 0.0  ;;  %v2399_v21 = vpop.f32.mrb[20].mxu0  ;;  %v934_v17 = vld [vmem:[%s3364_s30 + $0xf0] sm:$0xff] }
 0x242   : > { %v1218_v23 = vmax.f32 %v1166_v18, 0.0  ;;  %v2447_v24 = vpop.f32.mrb[20].mxu1  ;;  %v2400_v26 = vpop.f32.mrb[21].mxu0 }
 0x243   : > { %v1229_v27 = vpack.c.bf16 %v1202_v20, %v1201_v19  ;;  %v2401_v28 = vadd.f32 %v2400_v26, %v2399_v21  ;;  %v2448_v30 = vpop.f32.mrb[21].mxu1  ;;  %v2402_v31 = vpop.f32.mrb[22].mxu0 }
 0x244   : > { %v1237_v32 = vpack.c.bf16 %v1218_v23, %v1217_v22  ;;  %v2449_v33 = vadd.f32 %v2448_v30, %v2447_v24  ;;  %v2450_v34 = vpop.f32.mrb[22].mxu1  ;;  %v2403_v36 = vpop.f32.mrb[23].mxu0  ;;  %v919_v23 = vld [vmem:[%s3364_s30 + $0x78] sm:$0xff] }
 0x245   : > { %1248 = vst [vmem:[%s3522_s4 + $0x20] sm:$0xff] %v1229_v27  ;;  %v1107_v37 = vadd.f32 %v2401_v28, %v914_v25  ;;  %v2404_v38 = vadd.f32 %v2403_v36, %v2402_v31  ;;  %v2451_v40 = vpop.f32.mrb[23].mxu1  ;;  %v935_v27 = vld [vmem:[%s3364_s30 + $0xf8] sm:$0xff] }
 0x246   : > { %1256 = vst [vmem:[%s3522_s4 + $0x60] sm:$0xff] %v1237_v32  ;;  %v1171_v41 = vadd.f32 %v2449_v33, %v930_v29  ;;  %v2452_v42 = vadd.f32 %v2451_v40, %v2450_v34 }
 0x247   : > { %v1110_v43 = vadd.f32 %v2404_v38, %v915_v35  ;;  %v1203_v45 = vmax.f32 %v1107_v37, 0.0 }
 0x248   : > { %v1174_v44 = vadd.f32 %v2452_v42, %v931_v39  ;;  %v1219_v48 = vmax.f32 %v1171_v41, 0.0 }
 0x249   : > { %v1204_v46 = vmax.f32 %v1110_v43, 0.0  ;;  %v2405_v47 = vpop.f32.mrb[24].mxu0 }
 0x24a   : > { %v1220_v49 = vmax.f32 %v1174_v44, 0.0  ;;  %v2453_v50 = vpop.f32.mrb[24].mxu1  ;;  %v2406_v52 = vpop.f32.mrb[25].mxu0 }
 0x24b   : > { %v1230_v53 = vpack.c.bf16 %v1204_v46, %v1203_v45  ;;  %v2407_v54 = vadd.f32 %v2406_v52, %v2405_v47  ;;  %v2454_v56 = vpop.f32.mrb[25].mxu1  ;;  %v2408_v57 = vpop.f32.mrb[26].mxu0 }
 0x24c   : > { %v1238_v58 = vpack.c.bf16 %v1220_v49, %v1219_v48  ;;  %v2455_v59 = vadd.f32 %v2454_v56, %v2453_v50  ;;  %v2456_v60 = vpop.f32.mrb[26].mxu1  ;;  %v2409_v62 = vpop.f32.mrb[27].mxu0 }
 0x24d   : > { %1249 = vst [vmem:[%s3522_s4 + $0x28] sm:$0xff] %v1230_v53  ;;  %v1115_v63 = vadd.f32 %v2407_v54, %v916_v51  ;;  %v2410_v0 = vadd.f32 %v2409_v62, %v2408_v57  ;;  %v2457_v2 = vpop.f32.mrb[27].mxu1 }
 0x24e   : > { %1257 = vst [vmem:[%s3522_s4 + $0x68] sm:$0xff] %v1238_v58  ;;  %v1179_v3 = vadd.f32 %v2455_v59, %v932_v55  ;;  %v2458_v4 = vadd.f32 %v2457_v2, %v2456_v60 }
 0x24f   : > { %v1118_v5 = vadd.f32 %v2410_v0, %v917_v61  ;;  %v1205_v7 = vmax.f32 %v1115_v63, 0.0 }
 0x250   : > { %v1182_v6 = vadd.f32 %v2458_v4, %v933_v1  ;;  %v1221_v10 = vmax.f32 %v1179_v3, 0.0 }
 0x251   : > { %v1206_v8 = vmax.f32 %v1118_v5, 0.0  ;;  %v2411_v9 = vpop.f32.mrb[28].mxu0 }
 0x252   : > { %v1222_v11 = vmax.f32 %v1182_v6, 0.0  ;;  %v2459_v12 = vpop.f32.mrb[28].mxu1  ;;  %v2412_v14 = vpop.f32.mrb[29].mxu0 }
 0x253   : > { %v1231_v15 = vpack.c.bf16 %v1206_v8, %v1205_v7  ;;  %v2413_v16 = vadd.f32 %v2412_v14, %v2411_v9  ;;  %v2460_v18 = vpop.f32.mrb[29].mxu1  ;;  %v2414_v19 = vpop.f32.mrb[30].mxu0 }
 0x254   : > { %v1239_v20 = vpack.c.bf16 %v1222_v11, %v1221_v10  ;;  %v2461_v21 = vadd.f32 %v2460_v18, %v2459_v12  ;;  %v2462_v22 = vpop.f32.mrb[30].mxu1  ;;  %v2415_v24 = vpop.f32.mrb[31].mxu0 }
 0x255   : > { %1250 = vst [vmem:[%s3522_s4 + $0x30] sm:$0xff] %v1231_v15  ;;  %v1123_v25 = vadd.f32 %v2413_v16, %v918_v13  ;;  %v2416_v26 = vadd.f32 %v2415_v24, %v2414_v19  ;;  %v2463_v28 = vpop.f32.mrb[31].mxu1 }
 0x256   : > { %1258 = vst [vmem:[%s3522_s4 + $0x70] sm:$0xff] %v1239_v20  ;;  %v1187_v29 = vadd.f32 %v2461_v21, %v934_v17  ;;  %v2464_v30 = vadd.f32 %v2463_v28, %v2462_v22 }
 0x257   : > { %v1126_v31 = vadd.f32 %v2416_v26, %v919_v23  ;;  %v1207_v33 = vmax.f32 %v1123_v25, 0.0 }
 0x258   : > { %v1190_v32 = vadd.f32 %v2464_v30, %v935_v27  ;;  %v1223_v35 = vmax.f32 %v1187_v29, 0.0 }
 0x259   : > { %v1208_v34 = vmax.f32 %v1126_v31, 0.0 }
 0x25a   : > { %v1224_v36 = vmax.f32 %v1190_v32, 0.0 }
 0x25b   : > { %v1232_v37 = vpack.c.bf16 %v1208_v34, %v1207_v33 }
 0x25c   : > { %v1240_v38 = vpack.c.bf16 %v1224_v36, %v1223_v35 }
 0x25d   : > { %1251 = vst [vmem:[%s3522_s4 + $0x38] sm:$0xff] %v1232_v37 }
 0x25e   : > { %1259 = vst [vmem:[%s3522_s4 + $0x78] sm:$0xff] %v1240_v38 }
 0x25f PF: > { %s3882_s12 = sld [smem:[#allocation20_spill]]  ;;  %s3883_s3 = sld [smem:[#allocation21_spill]]  ;;  %v1280_v39 = vlaneseq  ;;  %v1279_v45 = vld [vmem:[%s553_s22] sm:$0x3]  ;;  %v3047_v59 = vmov 1.0|1.0  }
 0x260   : > { %v1403_v33 = vld [vmem:[#allocation2] sm:$0xff] }
 0x261   : > { %v3574_v44 = vshrl.u32 %v1280_v39, 7  ;;  %v1411_v35 = vld [vmem:[#allocation2 + $0x40] sm:$0xff] }
 0x263   : > { %v1282_v46 = vadd.s32 8, %v3574_v44  ;;  %v1321_v48 = vsub.s32 1, %v3574_v44  ;;  %v1289_v50 = vadd.s32 64, %v3574_v44  ;;  %v1290_v51 = vadd.s32 72, %v3574_v44 }
 0x264   : > { %v1317_v0 = vsub.s32 0, %v3574_v44  ;;  %v1283_v2 = vadd.s32 16, %v3574_v44  ;;  %v1284_v3 = vadd.s32 24, %v3574_v44  ;;  %v1291_v5 = vadd.s32 80, %v3574_v44 }
 0x265   : > { %s2351_s5 = sshll.u32 %s3882_s12, 7  ;;  %s2292_s7 = sshll.u32 %s3883_s3, 7  ;;  %v3594_v54 = vrot.slane %v1279_v45, %v1321_v48  ;;  %v1292_v6 = vadd.s32 88, %v3574_v44  ;;  %v1285_v15 = vadd.s32 32, %v3574_v44  ;;  %v1286_v16 = vadd.s32 40, %v3574_v44 }
 0x266   : > { %v3567_v40 = vstv %s2292_s7  ;;  %s3569_s18 = scalar_lea.vmem [#allocation3], %s2351_s5  ;;  %v3625_v7 = vrot.slane %v1279_v45, %v1317_v0  ;;  %v1293_v17 = vadd.s32 96, %v3574_v44  ;;  %v1294_v18 = vadd.s32 104, %v3574_v44  ;;  %p2325_p5 = scmp.ne.s32.totalorder %s3882_s12, 1 }
 0x267   : > { %v1271_v41 = vld [vmem:[%s3569_s18 + $0x40] sm:$0xff]  ;;  %v1272_v43 = vld [vmem:[%s3569_s18 + $0x48] sm:$0xff]  ;;  %v3584_v47 = vadd.s32 %v3567_v40, %v3574_v44  ;;  %v1273_v52 = vld [vmem:[%s3569_s18 + $0x50] sm:$0xff]  ;;  %v3592_v53 = vadd.s32 %v3567_v40, %v1282_v46  ;;  %v3597_v55 = vadd.s32 %v3567_v40, %v1289_v50  ;;  %v3600_v56 = vadd.s32 %v3567_v40, %v1290_v51  ;;  %s1552_s25 = sld [smem:[#allocation4]] (!%p2325_p5)  ;;  %s3885_s23 = sld [smem:[#allocation28_spill]] (!%p2325_p5) }
 0x268   : > { %v1263_v42 = vld [vmem:[%s3569_s18] sm:$0xff]  ;;  %2465 = vmatprep.subr.bf16.mxu0 %v1271_v41  ;;  %2641 = vmatprep.subr.bf16.mxu1 %v1271_v41  ;;  %v1264_v49 = vld [vmem:[%s3569_s18 + $0x8] sm:$0xff]  ;;  %v1265_v57 = vld [vmem:[%s3569_s18 + $0x10] sm:$0xff]  ;;  %v1301_v9 = vadd.s32 %v3567_v40, %v1283_v2  ;;  %v1302_v10 = vadd.s32 %v3567_v40, %v1284_v3  ;;  %v1309_v12 = vadd.s32 %v3567_v40, %v1291_v5  ;;  %v1287_v23 = vadd.s32 48, %v3574_v44  ;;  %s3886_s13 = sld [smem:[#allocation29_spill]] (!%p2325_p5) }
 0x269   : > { %2466 = vmatpush3.bf16.msra.mxu0 %v1263_v42  ;;  %2649 = vmatpush3.bf16.msra.mxu1 %v1263_v42  ;;  %vm1324_vm0 = vcmp.eq.s32.totalorder %v3584_v47, %v3594_v54  ;;  %vm1326_vm1 = vcmp.eq.s32.totalorder %v3592_v53, %v3594_v54  ;;  %vm1340_vm3 = vcmp.eq.s32.totalorder %v3597_v55, %v3594_v54  ;;  %v1274_v58 = vld [vmem:[%s3569_s18 + $0x58] sm:$0xff]  ;;  %v1275_v61 = vld [vmem:[%s3569_s18 + $0x60] sm:$0xff]  ;;  %v1276_v63 = vld [vmem:[%s3569_s18 + $0x68] sm:$0xff]  ;;  %v1288_v24 = vadd.s32 56, %v3574_v44 }
 0x26a   : > { %2467 = vmatprep.subr.bf16.mxu0 %v1272_v43  ;;  %2642 = vmatprep.subr.bf16.mxu1 %v1272_v43  ;;  %vm2293_vm2 = vmpackc.low %vm1326_vm1, %vm1324_vm0  ;;  %vm1342_vm4 = vcmp.eq.s32.totalorder %v3600_v56, %v3594_v54  ;;  %v1266_v60 = vld [vmem:[%s3569_s18 + $0x18] sm:$0xff]  ;;  %v1267_v62 = vld [vmem:[%s3569_s18 + $0x20] sm:$0xff]  ;;  %v1310_v13 = vadd.s32 %v3567_v40, %v1292_v6  ;;  %vm1323_vm5 = vcmp.eq.s32.totalorder %v3584_v47, %v3625_v7  ;;  %v1295_v25 = vadd.s32 112, %v3574_v44 }
 0x26b   : > { %2294 = vmatprep.mubr.msk.bf16.mxu0 %vm2293_vm2, %v3047_v59  ;;  %vm2309_vm6 = vmpackc.low %vm1342_vm4, %vm1340_vm3  ;;  %v1268_v1 = vld [vmem:[%s3569_s18 + $0x28] sm:$0xff]  ;;  %v1277_v4 = vld [vmem:[%s3569_s18 + $0x70] sm:$0xff]  ;;  %vm1325_vm7 = vcmp.eq.s32.totalorder %v3592_v53, %v3625_v7  ;;  %vm1339_vm8 = vcmp.eq.s32.totalorder %v3597_v55, %v3625_v7  ;;  %vm1341_vm9 = vcmp.eq.s32.totalorder %v3600_v56, %v3625_v7  ;;  %vm1328_vm10 = vcmp.eq.s32.totalorder %v1301_v9, %v3594_v54 }
 0x26c   : > { %2310 = vmatprep.mubr.msk.bf16.mxu1 %vm2309_vm6, %v3047_v59  ;;  %v1269_v8 = vld [vmem:[%s3569_s18 + $0x30] sm:$0xff]  ;;  %v1278_v11 = vld [vmem:[%s3569_s18 + $0x78] sm:$0xff]  ;;  %vm1330_vm11 = vcmp.eq.s32.totalorder %v1302_v10, %v3594_v54  ;;  %vm2295_vm12 = vmpackc.low %vm1325_vm7, %vm1323_vm5  ;;  %vm1344_vm13 = vcmp.eq.s32.totalorder %v1309_v12, %v3594_v54  ;;  %vm1346_vm14 = vcmp.eq.s32.totalorder %v1310_v13, %v3594_v54  ;;  %v1303_v19 = vadd.s32 %v3567_v40, %v1285_v15 }
 0x26d   : > { %2468 = vmatpush3.bf16.msra.mxu0 %v1264_v49  ;;  %2650 = vmatpush3.bf16.msra.mxu1 %v1264_v49  ;;  %v1270_v14 = vld [vmem:[%s3569_s18 + $0x38] sm:$0xff]  ;;  %vm2311_vm15 = vmpackc.low %vm1341_vm9, %vm1339_vm8  ;;  %v1304_v20 = vadd.s32 %v3567_v40, %v1286_v16  ;;  %v1311_v21 = vadd.s32 %v3567_v40, %v1293_v17  ;;  %v1312_v22 = vadd.s32 %v3567_v40, %v1294_v18  ;;  %v1296_v26 = vadd.s32 120, %v3574_v44  ;;  %v1404_v41 = vld [vmem:[#allocation2 + $0x8] sm:$0xff]  ;;  %s1553_s22 = sadd.f32 (!%p2325_p5), 1.0, %s1552_s25 }
 0x26e   : > { %2469 = vmatprep.subr.bf16.mxu0 %v1273_v52  ;;  %2643 = vmatprep.subr.bf16.mxu1 %v1273_v52  ;;  %vm2297_vm0 = vmpackc.low %vm1330_vm11, %vm1328_vm10  ;;  %vm1327_vm2 = vcmp.eq.s32.totalorder %v1301_v9, %v3625_v7  ;;  %vm1329_vm3 = vcmp.eq.s32.totalorder %v1302_v10, %v3625_v7  ;;  %vm1343_vm4 = vcmp.eq.s32.totalorder %v1309_v12, %v3625_v7  ;;  %v1412_v43 = vld [vmem:[#allocation2 + $0x48] sm:$0xff]  ;;  %v1405_v53 = vld [vmem:[#allocation2 + $0x10] sm:$0xff] }
 0x26f   : > { %vm2313_vm1 = vmpackc.low %vm1346_vm14, %vm1344_vm13  ;;  %vm1345_vm6 = vcmp.eq.s32.totalorder %v1310_v13, %v3625_v7  ;;  %vm1332_vm5 = vcmp.eq.s32.totalorder %v1303_v19, %v3594_v54  ;;  %vm1334_vm7 = vcmp.eq.s32.totalorder %v1304_v20, %v3594_v54  ;;  %vm1348_vm9 = vcmp.eq.s32.totalorder %v1311_v21, %v3594_v54  ;;  %v1413_v55 = vld [vmem:[#allocation2 + $0x50] sm:$0xff]  ;;  %v1407_v9 = vld [vmem:[#allocation2 + $0x20] sm:$0xff] }
 0x270   : > { %vm2299_vm8 = vmpackc.low %vm1329_vm3, %vm1327_vm2  ;;  %vm1350_vm10 = vcmp.eq.s32.totalorder %v1312_v22, %v3594_v54  ;;  %v1305_v27 = vadd.s32 %v3567_v40, %v1287_v23  ;;  %v1306_v28 = vadd.s32 %v3567_v40, %v1288_v24  ;;  %v1313_v29 = vadd.s32 %v3567_v40, %v1295_v25  ;;  %v1408_v17 = vld [vmem:[#allocation2 + $0x28] sm:$0xff] }
 0x271   : > { %2470 = vmatpush3.bf16.msra.mxu0 %v1265_v57  ;;  %2651 = vmatpush3.bf16.msra.mxu1 %v1265_v57  ;;  %vm2315_vm11 = vmpackc.low %vm1345_vm6, %vm1343_vm4  ;;  %v1314_v30 = vadd.s32 %v3567_v40, %v1296_v26  ;;  %vm1331_vm14 = vcmp.eq.s32.totalorder %v1303_v19, %v3625_v7  ;;  %v1416_v19 = vld [vmem:[#allocation2 + $0x68] sm:$0xff] }
 0x272   : > { %2471 = vmatprep.subr.bf16.mxu0 %v1274_v58  ;;  %2644 = vmatprep.subr.bf16.mxu1 %v1274_v58  ;;  %vm2317_vm13 = vmpackc.low %vm1350_vm10, %vm1348_vm9  ;;  %vm1336_vm2 = vcmp.eq.s32.totalorder %v1305_v27, %v3594_v54  ;;  %vm1338_vm3 = vcmp.eq.s32.totalorder %v1306_v28, %v3594_v54  ;;  %vm1352_vm6 = vcmp.eq.s32.totalorder %v1313_v29, %v3594_v54 }
 0x273   : > { %vm1335_vm10 = vcmp.eq.s32.totalorder %v1305_v27, %v3625_v7 }
 0x275   : > { %2472 = vmatpush3.bf16.msra.mxu0 %v1266_v60  ;;  %2652 = vmatpush3.bf16.msra.mxu1 %v1266_v60 }
 0x276   : > { %2473 = vmatprep.subr.bf16.mxu0 %v1275_v61  ;;  %2645 = vmatprep.subr.bf16.mxu1 %v1275_v61  ;;  %v1406_v61 = vld [vmem:[#allocation2 + $0x18] sm:$0xff] }
 0x279   : > { %2474 = vmatpush3.bf16.msra.mxu0 %v1267_v62  ;;  %2653 = vmatpush3.bf16.msra.mxu1 %v1267_v62 }
 0x27a   : > { %2475 = vmatprep.subr.bf16.mxu0 %v1276_v63  ;;  %2646 = vmatprep.subr.bf16.mxu1 %v1276_v63  ;;  %v1414_v63 = vld [vmem:[#allocation2 + $0x58] sm:$0xff] }
 0x27d   : > { %2476 = vmatpush3.bf16.msra.mxu0 %v1268_v1  ;;  %2654 = vmatpush3.bf16.msra.mxu1 %v1268_v1 }
 0x27e   : > { %2477 = vmatprep.subr.bf16.mxu0 %v1277_v4  ;;  %2647 = vmatprep.subr.bf16.mxu1 %v1277_v4 }
 0x281   : > { %2478 = vmatpush3.bf16.msra.mxu0 %v1269_v8  ;;  %2655 = vmatpush3.bf16.msra.mxu1 %v1269_v8 }
 0x282   : > { %2479 = vmatprep.subr.bf16.mxu0 %v1278_v11  ;;  %2648 = vmatprep.subr.bf16.mxu1 %v1278_v11  ;;  %v1415_v11 = vld [vmem:[#allocation2 + $0x60] sm:$0xff] }
 0x285   : > { %2480 = vmatpush3.bf16.msra.mxu0 %v1270_v14  ;;  %2656 = vmatpush3.bf16.msra.mxu1 %v1270_v14 }
 0x288   : > { %2296 = vmatmul.mubr.msk.bf16.vlgmr.msra.gmra.mrb[0].mxu0 %vm2295_vm12, %v3047_v59  ;;  %2312 = vmatmul.mubr.msk.bf16.vlgmr.msra.gmra.mrb[0].mxu1 %vm2311_vm15, %v3047_v59  ;;  %vm2301_vm12 = vmpackc.low %vm1334_vm7, %vm1332_vm5  ;;  %vm1333_vm15 = vcmp.eq.s32.totalorder %v1304_v20, %v3625_v7  ;;  %vm1354_vm5 = vcmp.eq.s32.totalorder %v1314_v30, %v3594_v54 }
 0x289   : > { %2298 = vmatprep.mubr.msk.bf16.mxu0 %vm2297_vm0, %v3047_v59  ;;  %2314 = vmatprep.mubr.msk.bf16.mxu1 %vm2313_vm1, %v3047_v59  ;;  %vm1347_vm0 = vcmp.eq.s32.totalorder %v1311_v21, %v3625_v7  ;;  %vm1349_vm1 = vcmp.eq.s32.totalorder %v1312_v22, %v3625_v7  ;;  %vm2303_vm4 = vmpackc.low %vm1333_vm15, %vm1331_vm14 }
 0x28a   : > { %vm2319_vm7 = vmpackc.low %vm1349_vm1, %vm1347_vm0 }
 0x28b   : > { %vm2321_vm9 = vmpackc.low %vm1354_vm5, %vm1352_vm6 }
 0x290   : > { %2300 = vmatmul.mubr.msk.bf16.gmra.mrb[4].mxu0 %vm2299_vm8, %v3047_v59  ;;  %2316 = vmatmul.mubr.msk.bf16.gmra.mrb[4].mxu1 %vm2315_vm11, %v3047_v59  ;;  %vm2305_vm8 = vmpackc.low %vm1338_vm3, %vm1336_vm2  ;;  %vm1337_vm11 = vcmp.eq.s32.totalorder %v1306_v28, %v3625_v7 }
 0x291   : > { %2302 = vmatprep.mubr.msk.bf16.mxu0 %vm2301_vm12, %v3047_v59  ;;  %2318 = vmatprep.mubr.msk.bf16.mxu1 %vm2317_vm13, %v3047_v59  ;;  %vm1351_vm12 = vcmp.eq.s32.totalorder %v1313_v29, %v3625_v7  ;;  %vm1353_vm13 = vcmp.eq.s32.totalorder %v1314_v30, %v3625_v7  ;;  %vm2307_vm14 = vmpackc.low %vm1337_vm11, %vm1335_vm10  ;;  %v1409_v29 = vld [vmem:[#allocation2 + $0x30] sm:$0xff] }
 0x292   : > { %vm2323_vm15 = vmpackc.low %vm1353_vm13, %vm1351_vm12 }
 0x298   : > { %2304 = vmatmul.mubr.msk.bf16.gmra.mrb[8].mxu0 %vm2303_vm4, %v3047_v59  ;;  %2320 = vmatmul.mubr.msk.bf16.gmra.mrb[8].mxu1 %vm2319_vm7, %v3047_v59 }
 0x299   : > { %2306 = vmatprep.mubr.msk.bf16.mxu0 %vm2305_vm8, %v3047_v59  ;;  %2322 = vmatprep.mubr.msk.bf16.mxu1 %vm2321_vm9, %v3047_v59 }
 0x2a0   : > { %2308 = vmatmul.mubr.msk.bf16.gmra.mrb[12].mxu0 %vm2307_vm14, %v3047_v59  ;;  %2324 = vmatmul.mubr.msk.bf16.gmra.mrb[12].mxu1 %vm2323_vm15, %v3047_v59 }
 0x35b   : > { %v2481_v31 = vpop.f32.mrb[0].mxu0  ;;  %v2505_v32 = vpop.f32.mrb[0].mxu1 }
 0x35c   : > { %v2482_v34 = vpop.f32.mrb[1].mxu0  ;;  %v2506_v36 = vpop.f32.mrb[1].mxu1 }
 0x35d   : > { %v2483_v37 = vadd.f32 %v2482_v34, %v2481_v31  ;;  %v2507_v38 = vadd.f32 %v2506_v36, %v2505_v32  ;;  %v2484_v39 = vpop.f32.mrb[2].mxu0  ;;  %v2508_v40 = vpop.f32.mrb[2].mxu1  ;;  %v1417_v31 = vld [vmem:[#allocation2 + $0x70] sm:$0xff] }
 0x35e   : > { %v2485_v42 = vpop.f32.mrb[3].mxu0  ;;  %v2509_v44 = vpop.f32.mrb[3].mxu1 }
 0x35f   : > { %v1516_v45 = vadd.f32 %v2483_v37, %v1403_v33  ;;  %v1524_v46 = vadd.f32 %v2507_v38, %v1411_v35  ;;  %v2486_v47 = vadd.f32 %v2485_v42, %v2484_v39  ;;  %v2510_v48 = vadd.f32 %v2509_v44, %v2508_v40  ;;  %v1410_v37 = vld [vmem:[#allocation2 + $0x38] sm:$0xff] }
 0x360   : > { %v1418_v39 = vld [vmem:[#allocation2 + $0x78] sm:$0xff] }
 0x361   : > { %1532 = vst [vmem:[#allocation2] sm:$0xff] %v1516_v45  ;;  %1540 = vst [vmem:[#allocation2 + $0x40] sm:$0xff] %v1524_v46  ;;  %v1517_v49 = vadd.f32 %v2486_v47, %v1404_v41  ;;  %v1525_v50 = vadd.f32 %v2510_v48, %v1412_v43  ;;  %v2794_v47 = vld [vmem:[#allocation10] sm:$0xff] (!%p2325_p5)   ;;  %v2795_v48 = vld [vmem:[#allocation10 + $0x8] sm:$0xff] (!%p2325_p5)  }
 0x362   : > { %2561 = vmatprep.subr.bf16.mxu0 (!%p2325_p5), %v2794_v47 }
 0x363   : > { %1533 = vst [vmem:[#allocation2 + $0x8] sm:$0xff] %v1517_v49  ;;  %1541 = vst [vmem:[#allocation2 + $0x48] sm:$0xff] %v1525_v50  ;;  %v2487_v51 = vpop.f32.mrb[4].mxu0  ;;  %v2511_v52 = vpop.f32.mrb[4].mxu1  ;;  %2562 = vmatpush3.bf16.msra.mxu0 (!%p2325_p5), %v2794_v47  ;;  %v2796_v49 = vld [vmem:[#allocation10 + $0x10] sm:$0xff] (!%p2325_p5)   ;;  %v2797_v50 = vld [vmem:[#allocation10 + $0x18] sm:$0xff] (!%p2325_p5)  }
 0x364   : > { %v2488_v54 = vpop.f32.mrb[5].mxu0  ;;  %v2512_v56 = vpop.f32.mrb[5].mxu1  ;;  %2563 = vmatprep.subr.bf16.mxu0 (!%p2325_p5), %v2795_v48 }
 0x365   : > { %v2489_v57 = vadd.f32 %v2488_v54, %v2487_v51  ;;  %v2513_v58 = vadd.f32 %v2512_v56, %v2511_v52  ;;  %v2490_v59 = vpop.f32.mrb[6].mxu0  ;;  %v2514_v60 = vpop.f32.mrb[6].mxu1  ;;  %v2798_v51 = vld [vmem:[#allocation10 + $0x20] sm:$0xff] (!%p2325_p5)   ;;  %v2799_v54 = vld [vmem:[#allocation10 + $0x28] sm:$0xff] (!%p2325_p5)  }
 0x366   : > { %v2491_v62 = vpop.f32.mrb[7].mxu0  ;;  %v2515_v0 = vpop.f32.mrb[7].mxu1  ;;  %v1554_v52 = vld [vmem:[%s3337_s19] sm:$0xff] (!%p2325_p5) }
 0x367   : > { %v1518_v1 = vadd.f32 %v2489_v57, %v1405_v53  ;;  %v1526_v2 = vadd.f32 %v2513_v58, %v1413_v55  ;;  %v2492_v3 = vadd.f32 %v2491_v62, %v2490_v59  ;;  %v2516_v4 = vadd.f32 %v2515_v0, %v2514_v60  ;;  %2564 = vmatpush3.bf16.msra.mxu0 (!%p2325_p5), %v2795_v48  ;;  %v1555_v53 = vld [vmem:[%s3337_s19 + $0x8] sm:$0xff] (!%p2325_p5)  ;;  %v1556_v60 = vld [vmem:[%s3337_s19 + $0x10] sm:$0xff] (!%p2325_p5)  ;;  %v1557_v62 = vld [vmem:[%s3337_s19 + $0x18] sm:$0xff] (!%p2325_p5) }
 0x368   : > { %2565 = vmatprep.subr.bf16.mxu0 (!%p2325_p5), %v2796_v49  ;;  %v3699_v55 = vstv (!%p2325_p5), %s1553_s22  ;;  %v1587_v56 = vld [vmem:[#allocation2] sm:$0xff] (!%p2325_p5) }
 0x369   : > { %1534 = vst [vmem:[#allocation2 + $0x10] sm:$0xff] %v1518_v1  ;;  %1542 = vst [vmem:[#allocation2 + $0x50] sm:$0xff] %v1526_v2  ;;  %v1519_v5 = vadd.f32 %v2492_v3, %v1406_v61  ;;  %v1527_v6 = vadd.f32 %v2516_v4, %v1414_v63  ;;  %v1571_v58 = vmul.f32 (!%p2325_p5), %v3699_v55, %v1554_v52  ;;  %v2800_v61 = vld [vmem:[#allocation10 + $0x30] sm:$0xff] (!%p2325_p5)   ;;  %v1558_v63 = vld [vmem:[%s3337_s19 + $0x20] sm:$0xff] (!%p2325_p5) }
 0x36a   : > { %v1588_v57 = vld [vmem:[#allocation2 + $0x8] sm:$0xff] (!%p2325_p5)  ;;  %v1572_v59 = vmul.f32 (!%p2325_p5), %v3699_v55, %v1555_v53  ;;  %v2802_v2 = vld [vmem:[#allocation11] sm:$0xff] (!%p2325_p5)  }
 0x36b   : > { %1535 = vst [vmem:[#allocation2 + $0x18] sm:$0xff] %v1519_v5  ;;  %1543 = vst [vmem:[#allocation2 + $0x58] sm:$0xff] %v1527_v6  ;;  %v2493_v7 = vpop.f32.mrb[8].mxu0  ;;  %v2517_v8 = vpop.f32.mrb[8].mxu1  ;;  %2566 = vmatpush3.bf16.msra.mxu0 (!%p2325_p5), %v2796_v49  ;;  %v1603_v0 = vadd.f32 (!%p2325_p5), %v1587_v56, %v1571_v58  ;;  %v1559_v3 = vld [vmem:[%s3337_s19 + $0x28] sm:$0xff] (!%p2325_p5)  ;;  %2593 = vmatprep.subr.bf16.mxu1 (!%p2325_p5), %v2802_v2 }
 0x36c   : > { %v2494_v10 = vpop.f32.mrb[9].mxu0  ;;  %v2518_v12 = vpop.f32.mrb[9].mxu1  ;;  %2567 = vmatprep.subr.bf16.mxu0 (!%p2325_p5), %v2797_v50  ;;  %v1604_v1 = vadd.f32 (!%p2325_p5), %v1588_v57, %v1572_v59  ;;  %2594 = vmatpush3.bf16.msra.mxu1 (!%p2325_p5), %v2802_v2 }
 0x36d   : > { %v2495_v13 = vadd.f32 %v2494_v10, %v2493_v7  ;;  %v2519_v14 = vadd.f32 %v2518_v12, %v2517_v8  ;;  %v2496_v15 = vpop.f32.mrb[10].mxu0  ;;  %v2520_v16 = vpop.f32.mrb[10].mxu1  ;;  %v2803_v7 = vld [vmem:[#allocation11 + $0x8] sm:$0xff] (!%p2325_p5)   ;;  %v2801_v8 = vld [vmem:[#allocation10 + $0x38] sm:$0xff] (!%p2325_p5)   ;;  %v1574_v10 = vmul.f32 (!%p2325_p5), %v3699_v55, %v1557_v62  ;;  %v1575_v12 = vmul.f32 (!%p2325_p5), %v3699_v55, %v1558_v63 }
 0x36e   : > { %v2497_v18 = vpop.f32.mrb[11].mxu0  ;;  %v2521_v20 = vpop.f32.mrb[11].mxu1  ;;  %v1619_v4 = vpack.c.bf16 (!%p2325_p5), %v1604_v1, %v1603_v0  ;;  %2595 = vmatprep.subr.bf16.mxu1 (!%p2325_p5), %v2803_v7 }
 0x36f   : > { %v1520_v21 = vadd.f32 %v2495_v13, %v1407_v9  ;;  %v1528_v22 = vadd.f32 %v2519_v14, %v1415_v11  ;;  %v2498_v23 = vadd.f32 %v2497_v18, %v2496_v15  ;;  %v2522_v24 = vadd.f32 %v2521_v20, %v2520_v16  ;;  %2568 = vmatpush3.bf16.msra.mxu0 (!%p2325_p5), %v2797_v50  ;;  %v2804_v14 = vld [vmem:[#allocation11 + $0x10] sm:$0xff] (!%p2325_p5)  }
 0x370   : > { %2569 = vmatprep.subr.bf16.mxu0 (!%p2325_p5), %v2798_v51  ;;  %v1589_v5 = vld [vmem:[#allocation2 + $0x10] sm:$0xff] (!%p2325_p5)  ;;  %v1573_v9 = vmul.f32 (!%p2325_p5), %v3699_v55, %v1556_v60  ;;  %2577 = vmatprep.mubr.bf16.mxu0 (!%p2325_p5), %v1619_v4  ;;  %v1576_v13 = vmul.f32 (!%p2325_p5), %v3699_v55, %v1559_v3 }
 0x371   : > { %1536 = vst [vmem:[#allocation2 + $0x20] sm:$0xff] %v1520_v21  ;;  %1544 = vst [vmem:[#allocation2 + $0x60] sm:$0xff] %v1528_v22  ;;  %v1521_v25 = vadd.f32 %v2498_v23, %v1408_v17  ;;  %v1529_v26 = vadd.f32 %v2522_v24, %v1416_v19  ;;  %2596 = vmatpush3.bf16.msra.mxu1 (!%p2325_p5), %v2803_v7  ;;  %v1560_v20 = vld [vmem:[%s3337_s19 + $0x30] sm:$0xff] (!%p2325_p5)  ;;  %v1561_v21 = vld [vmem:[%s3337_s19 + $0x38] sm:$0xff] (!%p2325_p5) }
 0x372   : > { %v1590_v6 = vld [vmem:[#allocation2 + $0x18] sm:$0xff] (!%p2325_p5)  ;;  %v1605_v16 = vadd.f32 (!%p2325_p5), %v1589_v5, %v1573_v9  ;;  %2597 = vmatprep.subr.bf16.mxu1 (!%p2325_p5), %v2804_v14  ;;  %v1562_v23 = vld [vmem:[%s3337_s19 + $0x40] sm:$0xff] (!%p2325_p5)  ;;  %v1563_v24 = vld [vmem:[%s3337_s19 + $0x48] sm:$0xff] (!%p2325_p5) }
 0x373   : > { %1537 = vst [vmem:[#allocation2 + $0x28] sm:$0xff] %v1521_v25  ;;  %1545 = vst [vmem:[#allocation2 + $0x68] sm:$0xff] %v1529_v26  ;;  %v2499_v27 = vpop.f32.mrb[12].mxu0  ;;  %v2523_v28 = vpop.f32.mrb[12].mxu1  ;;  %2570 = vmatpush3.bf16.msra.mxu0 (!%p2325_p5), %v2798_v51  ;;  %v1606_v17 = vadd.f32 (!%p2325_p5), %v1590_v6, %v1574_v10  ;;  %v2805_v22 = vld [vmem:[#allocation11 + $0x18] sm:$0xff] (!%p2325_p5)   ;;  %v1577_v26 = vmul.f32 (!%p2325_p5), %v3699_v55, %v1560_v20  ;;  %v1597_v49 = vld [vmem:[#allocation2 + $0x50] sm:$0xff] (!%p2325_p5) }
 0x374   : > { %v2500_v30 = vpop.f32.mrb[13].mxu0  ;;  %v2524_v32 = vpop.f32.mrb[13].mxu1  ;;  %2571 = vmatprep.subr.bf16.mxu0 (!%p2325_p5), %v2799_v54  ;;  %v1598_v50 = vld [vmem:[#allocation2 + $0x58] sm:$0xff] (!%p2325_p5)  ;;  %v1568_v60 = vld [vmem:[%s3337_s19 + $0x70] sm:$0xff] (!%p2325_p5)  ;;  %v2326_v9 = vld [vmem:[%s3885_s23] ss:$0 sm:$0xff] (!%p2325_p5) }
 0x375   : > { %v2501_v33 = vadd.f32 %v2500_v30, %v2499_v27  ;;  %v2525_v34 = vadd.f32 %v2524_v32, %v2523_v28  ;;  %v2502_v35 = vpop.f32.mrb[14].mxu0  ;;  %v2526_v36 = vpop.f32.mrb[14].mxu1  ;;  %1551 = sbr.rel (%p2325_p5) target bundleno = 1364 (0x554), region = 88  ;;  %v1620_v25 = vpack.c.bf16 (!%p2325_p5), %v1606_v17, %v1605_v16  ;;  %v1578_v27 = vmul.f32 (!%p2325_p5), %v3699_v55, %v1561_v21  ;;  %2598 = vmatpush3.bf16.msra.mxu1 (!%p2325_p5), %v2804_v14  ;;  %v2808_v7 = vld [vmem:[#allocation11 + $0x30] sm:$0xff] (!%p2325_p5)  }
 0x376   : > { %v2503_v38 = vpop.f32.mrb[15].mxu0  ;;  %v2527_v40 = vpop.f32.mrb[15].mxu1  ;;  %v1580_v32 = vmul.f32 (!%p2325_p5), %v3699_v55, %v1563_v24  ;;  %2599 = vmatprep.subr.bf16.mxu1 (!%p2325_p5), %v2805_v22  ;;  %v1585_v63 = vmul.f32 (!%p2325_p5), %v3699_v55, %v1568_v60 }
 0x377   : > { %v1522_v41 = vadd.f32 %v2501_v33, %v1409_v29  ;;  %v1530_v42 = vadd.f32 %v2525_v34, %v1417_v31  ;;  %v2504_v43 = vadd.f32 %v2503_v38, %v2502_v35  ;;  %v2528_v44 = vadd.f32 %v2527_v40, %v2526_v36  ;;  %2572 = vmatpush3.bf16.msra.mxu0 (!%p2325_p5), %v2799_v54  ;;  %v2806_v33 = vld [vmem:[#allocation11 + $0x20] sm:$0xff] (!%p2325_p5)   ;;  %v1596_v35 = vld [vmem:[#allocation2 + $0x48] sm:$0xff] (!%p2325_p5)  ;;  %v1564_v40 = vld [vmem:[%s3337_s19 + $0x50] sm:$0xff] (!%p2325_p5) }
 0x378   : > { %v1591_v11 = vld [vmem:[#allocation2 + $0x20] sm:$0xff] (!%p2325_p5)  ;;  %2573 = vmatprep.subr.bf16.mxu0 (!%p2325_p5), %v2800_v61  ;;  %v1579_v31 = vmul.f32 (!%p2325_p5), %v3699_v55, %v1562_v23 }
 0x379   : > { %1538 = vst [vmem:[#allocation2 + $0x30] sm:$0xff] %v1522_v41  ;;  %1546 = vst [vmem:[#allocation2 + $0x70] sm:$0xff] %v1530_v42  ;;  %v1523_v45 = vadd.f32 %v2504_v43, %v1410_v37  ;;  %v1531_v46 = vadd.f32 %v2528_v44, %v1418_v39  ;;  %v1607_v18 = vadd.f32 (!%p2325_p5), %v1591_v11, %v1575_v12  ;;  %v1595_v34 = vld [vmem:[#allocation2 + $0x40] sm:$0xff] (!%p2325_p5)  ;;  %2600 = vmatpush3.bf16.msra.mxu1 (!%p2325_p5), %v2805_v22  ;;  %v1565_v41 = vld [vmem:[%s3337_s19 + $0x58] sm:$0xff] (!%p2325_p5) }
 0x37a   : > { %v1592_v15 = vld [vmem:[#allocation2 + $0x28] sm:$0xff] (!%p2325_p5)  ;;  %v1611_v38 = vadd.f32 (!%p2325_p5), %v1595_v34, %v1579_v31  ;;  %v1612_v39 = vadd.f32 (!%p2325_p5), %v1596_v35, %v1580_v32  ;;  %2601 = vmatprep.subr.bf16.mxu1 (!%p2325_p5), %v2806_v33  ;;  %v1566_v43 = vld [vmem:[%s3337_s19 + $0x60] sm:$0xff] (!%p2325_p5)  ;;  %v1582_v47 = vmul.f32 (!%p2325_p5), %v3699_v55, %v1565_v41 }
 0x37b   : > { %1539 = vst [vmem:[#allocation2 + $0x38] sm:$0xff] %v1523_v45  ;;  %1547 = vst [vmem:[#allocation2 + $0x78] sm:$0xff] %v1531_v46  ;;  %2574 = vmatpush3.bf16.msra.mxu0 (!%p2325_p5), %v2800_v61  ;;  %v1608_v19 = vadd.f32 (!%p2325_p5), %v1592_v15, %v1576_v13  ;;  %v2807_v42 = vld [vmem:[#allocation11 + $0x28] sm:$0xff] (!%p2325_p5)   ;;  %v1581_v46 = vmul.f32 (!%p2325_p5), %v3699_v55, %v1564_v40  ;;  %v1583_v51 = vmul.f32 (!%p2325_p5), %v3699_v55, %v1566_v43  ;;  %v1599_v53 = vld [vmem:[#allocation2 + $0x60] sm:$0xff] (!%p2325_p5) }
 0x37c   : > { %2575 = vmatprep.subr.bf16.mxu0 %v2801_v8  ;;  %v1567_v44 = vld [vmem:[%s3337_s19 + $0x68] sm:$0xff]  ;;  %v1623_v48 = vpack.c.bf16 %v1612_v39, %v1611_v38  ;;  %v1614_v57 = vadd.f32 %v1598_v50, %v1582_v47  ;;  %v1569_v61 = vld [vmem:[%s3337_s19 + $0x78] sm:$0xff] }
 0x37d   : > { %v1621_v28 = vpack.c.bf16 %v1608_v19, %v1607_v18  ;;  %2602 = vmatpush3.bf16.msra.mxu1 %v2806_v33  ;;  %v1584_v52 = vmul.f32 %v3699_v55, %v1567_v44  ;;  %v1600_v54 = vld [vmem:[#allocation2 + $0x68] sm:$0xff]  ;;  %v1613_v56 = vadd.f32 %v1597_v49, %v1581_v46  ;;  %v1615_v58 = vadd.f32 %v1599_v53, %v1583_v51 }
 0x37e   : > { %2603 = vmatprep.subr.bf16.mxu1 %v2807_v42  ;;  %v1586_v0 = vmul.f32 %v3699_v55, %v1569_v61 }
 0x37f   : > { %2576 = vmatpush3.bf16.msra.mxu0 %v2801_v8  ;;  %v1616_v59 = vadd.f32 %v1600_v54, %v1584_v52  ;;  %v1624_v62 = vpack.c.bf16 %v1614_v57, %v1613_v56  ;;  %v2809_v8 = vld [vmem:[#allocation11 + $0x38] sm:$0xff]  }
 0x380   : > { %v1593_v29 = vld [vmem:[#allocation2 + $0x30] sm:$0xff] }
 0x381   : > { %v1609_v36 = vadd.f32 %v1593_v29, %v1577_v26  ;;  %2604 = vmatpush3.bf16.msra.mxu1 %v2807_v42  ;;  %v1625_v1 = vpack.c.bf16 %v1616_v59, %v1615_v58  ;;  %v1601_v2 = vld [vmem:[#allocation2 + $0x70] sm:$0xff] }
 0x382   : > { %v1594_v30 = vld [vmem:[#allocation2 + $0x38] sm:$0xff]  ;;  %2578 = vmatmul.mubr.bf16.vlgmr.msra.gmra.mrb[0].mxu0 %v1620_v25  ;;  %v1617_v4 = vadd.f32 %v1601_v2, %v1585_v63  ;;  %2605 = vmatprep.subr.bf16.mxu1 %v2808_v7  ;;  %v2335_v2 = vld [vmem:[%s3886_s13] ss:$0 sm:$0xff] }
 0x383   : > { %v1610_v37 = vadd.f32 %v1594_v30, %v1578_v27  ;;  %2581 = vmatprep.mubr.bf16.mxu0 %v1621_v28  ;;  %v1602_v3 = vld [vmem:[#allocation2 + $0x78] sm:$0xff] }
 0x384   : > { %v1618_v5 = vadd.f32 %v1602_v3, %v1586_v0 }
 0x385   : > { %v1622_v45 = vpack.c.bf16 %v1610_v37, %v1609_v36  ;;  %2606 = vmatpush3.bf16.msra.mxu1 %v2808_v7 }
 0x386   : > { %v1626_v6 = vpack.c.bf16 %v1618_v5, %v1617_v4  ;;  %2607 = vmatprep.subr.bf16.mxu1 %v2809_v8 }
 0x389   : > { %2608 = vmatpush3.bf16.msra.mxu1 %v2809_v8 }
 0x38a   : > { %2582 = vmatmul.mubr.bf16.gmra.mrb[4].mxu0 %v1622_v45 }
 0x38b   : > { %2585 = vmatprep.mubr.bf16.mxu0 %v1623_v48 }
 0x392   : > { %2586 = vmatmul.mubr.bf16.gmra.mrb[8].mxu0 %v1624_v62 }
 0x393   : > { %2589 = vmatprep.mubr.bf16.mxu0 %v1625_v1 }
 0x39a   : > { %2590 = vmatmul.mubr.bf16.gmra.mrb[12].mxu0 %v1626_v6 }
 0x455   : > { %v2579_v55 = vpop.f32.mrb[0].mxu0 }
 0x456   : > { %v1741_v10 = vadd.f32 %v2579_v55, %v2326_v9  ;;  %v1732_v11 = vpop.f32.mrb[1].mxu0 }
 0x457   : > { %v1733_v12 = vadd.f32 %v2326_v9, %v1732_v11  ;;  %v2580_v13 = vpop.f32.mrb[2].mxu0 }
 0x458   : > { %v1744_v14 = vadd.f32 %v2580_v13, %v2326_v9  ;;  %v1735_v15 = vpop.f32.mrb[3].mxu0  ;;  %v1797_v17 = vmax.f32 %v1741_v10, 0.0 }
 0x459   : > { %v1736_v16 = vadd.f32 %v2326_v9, %v1735_v15  ;;  %v1795_v19 = vmax.f32 %v1733_v12, 0.0 }
 0x45a   : > { %v1798_v18 = vmax.f32 %v1744_v14, 0.0 }
 0x45b   : > { %v1796_v20 = vmax.f32 %v1736_v16, 0.0 }
 0x45c   : > { %v1812_v21 = vpack.c.bf16 %v1798_v18, %v1797_v17 }
 0x45d   : > { %v2583_v22 = vpop.f32.mrb[4].mxu0  ;;  %v1811_v23 = vpack.c.bf16 %v1796_v20, %v1795_v19 }
 0x45e   : > { %v1757_v24 = vadd.f32 %v2583_v22, %v2326_v9  ;;  %v1748_v25 = vpop.f32.mrb[5].mxu0 }
 0x45f   : > { %v1749_v26 = vadd.f32 %v2326_v9, %v1748_v25  ;;  %v2584_v27 = vpop.f32.mrb[6].mxu0  ;;  %2609 = vmatprep.mubr.bf16.mxu1 %v1811_v23 }
 0x460   : > { %v1760_v28 = vadd.f32 %v2584_v27, %v2326_v9  ;;  %v1751_v29 = vpop.f32.mrb[7].mxu0  ;;  %2610 = vmatmul.mubr.bf16.vlgmr.msra.gmra.mrb[0].mxu1 %v1812_v21  ;;  %v1801_v31 = vmax.f32 %v1757_v24, 0.0 }
 0x461   : > { %v1752_v30 = vadd.f32 %v2326_v9, %v1751_v29  ;;  %v1799_v33 = vmax.f32 %v1749_v26, 0.0 }
 0x462   : > { %v1802_v32 = vmax.f32 %v1760_v28, 0.0 }
 0x463   : > { %v1800_v34 = vmax.f32 %v1752_v30, 0.0 }
 0x464   : > { %v1814_v35 = vpack.c.bf16 %v1802_v32, %v1801_v31 }
 0x465   : > { %v1813_v36 = vpack.c.bf16 %v1800_v34, %v1799_v33  ;;  %v2587_v37 = vpop.f32.mrb[8].mxu0 }
 0x466   : > { %v1773_v38 = vadd.f32 %v2587_v37, %v2326_v9  ;;  %v1764_v39 = vpop.f32.mrb[9].mxu0 }
 0x467   : > { %v1765_v40 = vadd.f32 %v2326_v9, %v1764_v39  ;;  %v2588_v41 = vpop.f32.mrb[10].mxu0  ;;  %2613 = vmatprep.mubr.bf16.mxu1 %v1813_v36 }
 0x468   : > { %v1776_v42 = vadd.f32 %v2588_v41, %v2326_v9  ;;  %v1767_v43 = vpop.f32.mrb[11].mxu0  ;;  %2614 = vmatmul.mubr.bf16.gmra.mrb[4].mxu1 %v1814_v35  ;;  %v1805_v45 = vmax.f32 %v1773_v38, 0.0 }
 0x469   : > { %v1768_v44 = vadd.f32 %v2326_v9, %v1767_v43  ;;  %v1803_v47 = vmax.f32 %v1765_v40, 0.0 }
 0x46a   : > { %v1806_v46 = vmax.f32 %v1776_v42, 0.0 }
 0x46b   : > { %v1804_v48 = vmax.f32 %v1768_v44, 0.0 }
 0x46c   : > { %v1816_v49 = vpack.c.bf16 %v1806_v46, %v1805_v45 }
 0x46d   : > { %v1815_v50 = vpack.c.bf16 %v1804_v48, %v1803_v47  ;;  %v2591_v51 = vpop.f32.mrb[12].mxu0 }
 0x46e   : > { %v1789_v52 = vadd.f32 %v2591_v51, %v2326_v9  ;;  %v1780_v53 = vpop.f32.mrb[13].mxu0 }
 0x46f   : > { %v1781_v54 = vadd.f32 %v2326_v9, %v1780_v53  ;;  %v2592_v56 = vpop.f32.mrb[14].mxu0  ;;  %2617 = vmatprep.mubr.bf16.mxu1 %v1815_v50 }
 0x470   : > { %v1792_v57 = vadd.f32 %v2592_v56, %v2326_v9  ;;  %v1783_v58 = vpop.f32.mrb[15].mxu0  ;;  %2618 = vmatmul.mubr.bf16.gmra.mrb[8].mxu1 %v1816_v49  ;;  %v1809_v60 = vmax.f32 %v1789_v52, 0.0 }
 0x471   : > { %v1784_v59 = vadd.f32 %v2326_v9, %v1783_v58  ;;  %v1807_v62 = vmax.f32 %v1781_v54, 0.0 }
 0x472   : > { %v1810_v61 = vmax.f32 %v1792_v57, 0.0 }
 0x473   : > { %v1808_v63 = vmax.f32 %v1784_v59, 0.0 }
 0x474   : > { %v1818_v0 = vpack.c.bf16 %v1810_v61, %v1809_v60 }
 0x475   : > { %v1817_v1 = vpack.c.bf16 %v1808_v63, %v1807_v62 }
 0x477   : > { %2621 = vmatprep.mubr.bf16.mxu1 %v1817_v1 }
 0x478   : > { %2622 = vmatmul.mubr.bf16.gmra.mrb[12].mxu1 %v1818_v0 }
 0x533   : > { %v2611_v3 = vpop.f32.mrb[0].mxu1 }
 0x534   : > { %v1933_v4 = vadd.f32 %v2611_v3, %v2335_v2  ;;  %v1924_v5 = vpop.f32.mrb[1].mxu1 }
 0x535   : > { %v1925_v6 = vadd.f32 %v2335_v2, %v1924_v5  ;;  %v2612_v7 = vpop.f32.mrb[2].mxu1 }
 0x536   : > { %v1989_v8 = vmax.f32 %v1933_v4, 0.0  ;;  %v1936_v9 = vadd.f32 %v2612_v7, %v2335_v2  ;;  %v1927_v55 = vpop.f32.mrb[3].mxu1 }
 0x537   : > { %v1987_v10 = vmax.f32 %v1925_v6, 0.0  ;;  %v1928_v11 = vadd.f32 %v2335_v2, %v1927_v55 }
 0x538   : > { %2005 = vst [vmem:[%s3371_s1 + $0x10] sm:$0xff] %v1989_v8  ;;  %v1990_v12 = vmax.f32 %v1936_v9, 0.0 }
 0x539   : > { %2003 = vst [vmem:[%s3371_s1] sm:$0xff] %v1987_v10  ;;  %v1988_v13 = vmax.f32 %v1928_v11, 0.0 }
 0x53a   : > { %2006 = vst [vmem:[%s3371_s1 + $0x18] sm:$0xff] %v1990_v12 }
 0x53b   : > { %2004 = vst [vmem:[%s3371_s1 + $0x8] sm:$0xff] %v1988_v13  ;;  %v2615_v14 = vpop.f32.mrb[4].mxu1 }
 0x53c   : > { %v1949_v15 = vadd.f32 %v2615_v14, %v2335_v2  ;;  %v1940_v16 = vpop.f32.mrb[5].mxu1 }
 0x53d   : > { %v1941_v17 = vadd.f32 %v2335_v2, %v1940_v16  ;;  %v2616_v18 = vpop.f32.mrb[6].mxu1 }
 0x53e   : > { %v1993_v19 = vmax.f32 %v1949_v15, 0.0  ;;  %v1952_v20 = vadd.f32 %v2616_v18, %v2335_v2  ;;  %v1943_v21 = vpop.f32.mrb[7].mxu1 }
 0x53f   : > { %v1991_v22 = vmax.f32 %v1941_v17, 0.0  ;;  %v1944_v23 = vadd.f32 %v2335_v2, %v1943_v21 }
 0x540   : > { %2009 = vst [vmem:[%s3371_s1 + $0x30] sm:$0xff] %v1993_v19  ;;  %v1994_v24 = vmax.f32 %v1952_v20, 0.0 }
 0x541   : > { %2007 = vst [vmem:[%s3371_s1 + $0x20] sm:$0xff] %v1991_v22  ;;  %v1992_v25 = vmax.f32 %v1944_v23, 0.0 }
 0x542   : > { %2010 = vst [vmem:[%s3371_s1 + $0x38] sm:$0xff] %v1994_v24 }
 0x543   : > { %2008 = vst [vmem:[%s3371_s1 + $0x28] sm:$0xff] %v1992_v25  ;;  %v2619_v26 = vpop.f32.mrb[8].mxu1 }
 0x544   : > { %v1965_v27 = vadd.f32 %v2619_v26, %v2335_v2  ;;  %v1956_v28 = vpop.f32.mrb[9].mxu1 }
 0x545   : > { %v1957_v29 = vadd.f32 %v2335_v2, %v1956_v28  ;;  %v2620_v30 = vpop.f32.mrb[10].mxu1 }
 0x546   : > { %v1997_v31 = vmax.f32 %v1965_v27, 0.0  ;;  %v1968_v32 = vadd.f32 %v2620_v30, %v2335_v2  ;;  %v1959_v33 = vpop.f32.mrb[11].mxu1 }
 0x547   : > { %v1995_v34 = vmax.f32 %v1957_v29, 0.0  ;;  %v1960_v35 = vadd.f32 %v2335_v2, %v1959_v33 }
 0x548   : > { %2013 = vst [vmem:[%s3371_s1 + $0x50] sm:$0xff] %v1997_v31  ;;  %v1998_v36 = vmax.f32 %v1968_v32, 0.0 }
 0x549   : > { %2011 = vst [vmem:[%s3371_s1 + $0x40] sm:$0xff] %v1995_v34  ;;  %v1996_v37 = vmax.f32 %v1960_v35, 0.0 }
 0x54a   : > { %2014 = vst [vmem:[%s3371_s1 + $0x58] sm:$0xff] %v1998_v36 }
 0x54b   : > { %2012 = vst [vmem:[%s3371_s1 + $0x48] sm:$0xff] %v1996_v37  ;;  %v2623_v38 = vpop.f32.mrb[12].mxu1 }
 0x54c   : > { %v1981_v39 = vadd.f32 %v2623_v38, %v2335_v2  ;;  %v1972_v40 = vpop.f32.mrb[13].mxu1 }
 0x54d   : > { %v1973_v41 = vadd.f32 %v2335_v2, %v1972_v40  ;;  %v2624_v42 = vpop.f32.mrb[14].mxu1 }
 0x54e   : > { %v2001_v43 = vmax.f32 %v1981_v39, 0.0  ;;  %v1984_v44 = vadd.f32 %v2624_v42, %v2335_v2  ;;  %v1975_v45 = vpop.f32.mrb[15].mxu1 }
 0x54f   : > { %v1999_v46 = vmax.f32 %v1973_v41, 0.0  ;;  %v1976_v47 = vadd.f32 %v2335_v2, %v1975_v45 }
 0x550   : > { %2017 = vst [vmem:[%s3371_s1 + $0x70] sm:$0xff] %v2001_v43  ;;  %v2002_v48 = vmax.f32 %v1984_v44, 0.0 }
 0x551   : > { %2015 = vst [vmem:[%s3371_s1 + $0x60] sm:$0xff] %v1999_v46  ;;  %v2000_v49 = vmax.f32 %v1976_v47, 0.0 }
 0x552   : > { %2018 = vst [vmem:[%s3371_s1 + $0x78] sm:$0xff] %v2002_v48 }
 0x553   : > { %2016 = vst [vmem:[%s3371_s1 + $0x68] sm:$0xff] %v2000_v49 }
 0x554 PF: > { %s3887_s9 = sld [smem:[#allocation21_spill]]  ;;  %s3888_s27 = sld [smem:[#allocation22_spill]] }
 0x555   : > { %s3889_s5 = sld [smem:[#allocation30_spill]]  ;;  %s2033_s18 = sshll.u32 %s3371_s1, 4  ;;  %s3760_s18 = int_to_ptr.vmem [resolvable:$true] %s2033_s18 }
 0x556   : > { %s3890_s28 = sand.u32 1, %s3010_s16   ;;  %s2924_s10 = scalar_lea.vmem %s3760_s18, 2048 }
 0x557   : > { %s3764_s14 = scalar_lea.sflag [#allocation7], %s3890_s28  ;;  %p2925_p9 = scmp.ne.s32.totalorder %s3760_s18, %s2924_s10 }
 0x558   : > { %s3048_s25 = smov [#allocation13]  }
 0x559   : > { %s2928_s22 = sshll.u32 %s3048_s25, 4  ;;  %s2929_s22 = int_to_ptr.vmem [resolvable:$false] %s2928_s22 }
 0x55a   : > { %s2352_s4 = sshll.u32 %s3887_s9, 11  ;;  %p3891_p2 = scmp.ne.s32.totalorder %s3888_s27, 0 }
 0x55b   : > { %s3757_s7 = scalar_lea.hbm %s3889_s5, %s2352_s4  ;;  %s2930_s19 = scalar_lea.vmem %s2929_s22, 4096 }
 0x55c   : > { %p2926_p11 = pnand %p2925_p9, %p3891_p2  ;;  %p2931_p8 = scmp.lt.s32.totalorder %s3760_s18, %s2929_s22 }
 0x55d   : > { %p2932_p13 = scmp.lt.s32.totalorder %s2930_s19, %s2924_s10 }
 0x55e   : > { %p2927_p1 = pneg %p2926_p11 }
 0x55f   : > { %p2933_p0 = por %p2932_p13, %p2931_p8 }
 0x561   : > { %p2934_p6 = pnand %p2933_p0, %p2927_p1 }
 0x563   : > { %2937 = shalt.err (!%p2934_p6)
}
 0x564   : > { %s2938_s1 = scalar_lea.hbm %s3757_s7, 2048  ;;  %s2942_s29 = scalar_lea.hbm %s3889_s5, 4096 }
 0x565   : > { %p2939_p3 = scmp.ne.s32.totalorder %s3757_s7, %s2938_s1  ;;  %p2943_p4 = scmp.lt.u32.totalorder %s3757_s7, %s3889_s5 }
 0x566   : > { %p2944_p10 = scmp.lt.u32.totalorder %s2942_s29, %s2938_s1  ;;  %p2946_p9 = scmp.lt.u32.totalorder %s2938_s1, %s3757_s7 }
 0x567   : > { %p2940_p7 = pnand %p2939_p3, %p3891_p2 }
 0x568   : > { %p2945_p5 = por %p2944_p10, %p2943_p4 }
 0x569   : > { %p2941_p12 = pneg %p2940_p7 }
 0x56a   : > { %p2947_p11 = por %p2946_p9, %p2945_p5 }
 0x56c   : > { %p2948_p1 = pnand %p2947_p11, %p2941_p12 }
 0x56e   : > { %2951 = shalt.err (!%p2948_p1)
}
 0x56f   : > { %s3049_s9 = smov 128   ;;  %s3050_s4 = smov 8  }
 0x570   : > { %2671 = dma.vmem_to_hbm [thread:$0]  (%p3891_p2), %s3760_s18, 2048, %s3757_s7, %s3764_s14, %s3049_s9, %s3049_s9, %s3050_s4  }
 0x571 PF: > { %s3892_s12 = sld [smem:[#allocation19_spill]]  ;;  %s3893_s3 = sld [smem:[#allocation23_spill]] }
 0x572   : > { %p2698_p8 = scmp.ge.s32.totalorder %s3034_s0, 2 }
 0x577   : > { %s2048_s28 = sand.u32 1, %s3892_s12   ;;  %p3894_p13 = scmp.ne.s32.totalorder %s3893_s3, 0 }
 0x578   : > { %s2049_s10 = scalar_lea.sflag [#allocation7], %s2048_s28 }
 0x579   : > { %p2688_p0 = pnand %p2698_p8, %p3894_p13 }
 0x57b   : > { %3001 = dma.done.wait (!%p2688_p0), %s2049_s10, 2048  }
 0x57c   : > { %3003 = vsyncadd (!%p2688_p0), %s2049_s10, 4294965248  ;;  %s29_s0 = sadd.s32 1, %s3034_s0   ;;  %s3895_s27 = smov %s3904_s15 }
 0x57d   : > { %p26_p6 = scmp.ge.s32.totalorder %s29_s0, 6   ;;  %s3896_s15 = smov %s3010_s16 }
 0x57e   : > { %s3897_s16 = smov %s3014_s17  ;;  %s3898_s17 = smov %s3325_s24 }
 0x57f   : > { %s3899_s18 = smov %s3026_s20  ;;  %s3900_s19 = smov %s3030_s21 }
 0x580   : > { %s3901_s20 = smov %s3895_s27  ;;  %s3902_s21 = smov %s3908_s11 }
 0x581   :  { %28 = sbr.rel (!%p26_p6) target bundleno = 18 (0x12), region = 141 }
 0x588   :  { %2054 = vsyncpa [#allocation6], 1 }
 0x589   :  { %2056 = vsyncpa [#allocation6 + $0x1], 1 }
 0x58a   :  { %2057 = vsyncpa [#allocation9], 1 }
 0x58b   :  { %2059 = vsyncpa [#allocation9 + $0x1], 1 }
 0x58c   :  { %2060 = vsyncpa [#allocation12], 1 }
 0x58d   :  { %2061 = vsyncpa [#allocation7], 1 }
 0x58e   :  { %2063 = vsyncpa [#allocation7 + $0x1], 1 }

</bundles_post_ra>
